<compile_context>
chip_gen: v6e
topology: v6e:2x2x1
jax: 0.10.0
libtpu: 0.0.40
codegen_flags: <defaults>
</compile_context>

<pallas_src>
import functools

import jax
import jax.numpy as jnp
from jax.experimental import pallas as pl
from jax.experimental.pallas import tpu as pltpu

IMAGE_SIZE = 28 * 28      # 784 (= 6*128 + 16; full-array-width blocks are legal)
H_DIM = 400
H_PAD = 512               # 400 -> 512: lane-dense hidden width, zero extra MXU work
Z_DIM = 20
MU_PAD = 128              # mu lives in lanes [0:20) of the first lane tile
MULV_PAD = 256            # [ mu | 0 ... | log_var | 0 ... ], log_var starts at lane 128
EPS_PAD = 128             # eps padded to one lane tile -> whole-vreg reparam, K-dense fc4


def _round_up(n, m):
    return ((n + m - 1) // m) * m


def _vae_kernel(x_ref, eps_ref,
                w1_ref, b1_ref, w23_ref, b23_ref,
                w4_ref, b4_ref, w5_ref, b5_ref,
                xr_ref, mu_ref, lv_ref):
    f32 = jnp.float32
    bf16 = jnp.bfloat16

    x = x_ref[...]                     # (tb, 784) bf16
    eps = eps_ref[...]                 # (tb, 128) f32, cols [20:128) are zero

    # encode: h = relu(x @ W1 + b1)    -- bf16 MXU inputs, f32 accumulate
    h = jnp.dot(x, w1_ref[...], preferred_element_type=f32) + b1_ref[...]
    h = jnp.maximum(h, 0.0)            # (tb, 512); cols [400:512) are exactly 0

    # fused [mu || log_var] projection, 256 wide, lane-tile-aligned halves
    mulv = jnp.dot(h.astype(bf16), w23_ref[...],
                   preferred_element_type=f32) + b23_ref[...]
    mu_blk = mulv[:, :MU_PAD]          # (tb, 128)  lane-tile aligned slice
    lv_blk = mulv[:, MU_PAD:]          # (tb, 128)  lane-tile aligned slice

    # reparameterize: z = mu + eps * exp(log_var / 2)   (whole-vreg f32 math;
    # padded cols: 0 + 0 * exp(0) = 0, so z padding stays exactly zero)
    z = mu_blk + eps * jnp.exp(lv_blk * 0.5)

    # decode: h2 = relu(z @ W4 + b4); x_reconst = sigmoid(h2 @ W5 + b5)
    h2 = jnp.dot(z.astype(bf16), w4_ref[...],
                 preferred_element_type=f32) + b4_ref[...]
    h2 = jnp.maximum(h2, 0.0)
    logits = jnp.dot(h2.astype(bf16), w5_ref[...],
                     preferred_element_type=f32) + b5_ref[...]

    # sigmoid with the divide routed to the EUP (separate bundle slot)
    xr = pl.reciprocal(1.0 + jnp.exp(-logits), approx=True)

    xr_ref[...] = xr.astype(xr_ref.dtype)     # (tb, 784) bf16, no padding written
    mu_ref[...] = mu_blk[:, :Z_DIM]           # (tb, 20) f32, lane-0-aligned
    lv_ref[...] = lv_blk[:, :Z_DIM]           # (tb, 20) f32, lane-128-aligned source


def prepare_params(p):
    """Pack PyTorch-style params into the kernel layout (bf16, zero-padded)."""
    f32, bf16 = jnp.float32, jnp.bfloat16
    w1 = jnp.zeros((IMAGE_SIZE, H_PAD), f32).at[:, :H_DIM].set(p["w1"])
    b1 = jnp.zeros((1, H_PAD), f32).at[:, :H_DIM].set(p["b1"])
    w23 = jnp.zeros((H_PAD, MULV_PAD), f32)
    w23 = (w23.at[:H_DIM, :Z_DIM].set(p["w2"])
               .at[:H_DIM, MU_PAD:MU_PAD + Z_DIM].set(p["w3"]))
    b23 = jnp.zeros((1, MULV_PAD), f32)
    b23 = (b23.at[:, :Z_DIM].set(p["b2"])
               .at[:, MU_PAD:MU_PAD + Z_DIM].set(p["b3"]))
    w4 = jnp.zeros((EPS_PAD, H_PAD), f32).at[:Z_DIM, :H_DIM].set(p["w4"])
    b4 = jnp.zeros((1, H_PAD), f32).at[:, :H_DIM].set(p["b4"])
    w5 = jnp.zeros((H_PAD, IMAGE_SIZE), f32).at[:H_DIM, :].set(p["w5"])
    b5 = p["b5"].astype(f32)
    return dict(w1=w1.astype(bf16), b1=b1,
                w23=w23.astype(bf16), b23=b23,
                w4=w4.astype(bf16), b4=b4,
                w5=w5.astype(bf16), b5=b5)


def _pick_batch_tile(B, tb_max):
    """>=2 grid steps when the batch allows it (v7x megacore), tiles that avoid
    a mostly-padding last step, and a cap tied to the 32 MiB VMEM limit."""
    tb_max = max(16, min(int(tb_max), 512))
    if B <= 16:
        return _round_up(B, 8)
    n_steps = max(2, pl.cdiv(B, tb_max))
    return min(tb_max, _round_up(pl.cdiv(B, n_steps), 16))


@functools.partial(jax.jit, static_argnames=("tb_max",))
def vae_forward(x, eps, kp, tb_max=512):
    """x: (B, 784) bf16 (or f32), eps: (B, 20) f32, kp: from prepare_params."""
    B = x.shape[0]
    tb = _pick_batch_tile(B, tb_max)
    Bp = _round_up(B, tb)

    if Bp != B:
        x = jnp.pad(x, ((0, Bp - B), (0, 0)))
    # eps is tiny: pad it to a full lane tile (and to Bp rows) in one cheap op.
    eps = jnp.pad(eps, ((0, Bp - B), (0, EPS_PAD - eps.shape[1])))

    operands = (x, eps, kp["w1"], kp["b1"], kp["w23"], kp["b23"],
                kp["w4"], kp["b4"], kp["w5"], kp["b5"])

    const = lambda shape: pl.BlockSpec(shape, lambda i: (0,) * len(shape))
    in_specs = [
        pl.BlockSpec((tb, IMAGE_SIZE), lambda i: (i, 0)),   # x: batch-tiled
        pl.BlockSpec((tb, EPS_PAD), lambda i: (i, 0)),      # eps: batch-tiled
        const((IMAGE_SIZE, H_PAD)),  const((1, H_PAD)),     # w1, b1 (VMEM-resident)
        const((H_PAD, MULV_PAD)),    const((1, MULV_PAD)),  # w23, b23
        const((EPS_PAD, H_PAD)),     const((1, H_PAD)),     # w4, b4
        const((H_PAD, IMAGE_SIZE)),  const((1, IMAGE_SIZE)),# w5, b5
    ]

    out_shapes = (
        jax.ShapeDtypeStruct((Bp, IMAGE_SIZE), jnp.bfloat16),  # x_reconst, no padding
        jax.ShapeDtypeStruct((Bp, Z_DIM), jnp.float32),        # mu
        jax.ShapeDtypeStruct((Bp, Z_DIM), jnp.float32),        # log_var
    )
    out_specs = (
        pl.BlockSpec((tb, IMAGE_SIZE), lambda i: (i, 0)),
        pl.BlockSpec((tb, Z_DIM), lambda i: (i, 0)),
        pl.BlockSpec((tb, Z_DIM), lambda i: (i, 0)),
    )

    xr, mu, log_var = pl.pallas_call(
        _vae_kernel,
        grid=(Bp // tb,),
        in_specs=in_specs,
        out_specs=out_specs,
        out_shape=out_shapes,
        compiler_params=pltpu.CompilerParams(
            dimension_semantics=("parallel",),
            vmem_limit_bytes=32 * 1024 * 1024,   # sized to the tb<=512 cap
        ),
    )(*operands)

    if Bp != B:   # only slice rows when batch padding was actually added
        xr, mu, log_var = xr[:B], mu[:B], log_var[:B]
    return xr, mu, log_var


def init_params(key):
    """Deterministic init mirroring nn.Linear shapes (stored as (in, out)), f32."""
    def linear(k, fan_in, fan_out):
        k_w, k_b = jax.random.split(k)
        bound = 1.0 / jnp.sqrt(fan_in)
        w = jax.random.uniform(k_w, (fan_in, fan_out), jnp.float32, -bound, bound)
        b = jax.random.uniform(k_b, (1, fan_out), jnp.float32, -bound, bound)
        return w, b

    keys = jax.random.split(key, 5)
    w1, b1 = linear(keys[0], IMAGE_SIZE, H_DIM)
    w2, b2 = linear(keys[1], H_DIM, Z_DIM)
    w3, b3 = linear(keys[2], H_DIM, Z_DIM)
    w4, b4 = linear(keys[3], Z_DIM, H_DIM)
    w5, b5 = linear(keys[4], H_DIM, IMAGE_SIZE)
    return dict(w1=w1, b1=b1, w2=w2, b2=b2, w3=w3, b3=b3,
                w4=w4, b4=b4, w5=w5, b5=b5)


def reference_forward(x, eps, p):
    """Pure-JAX reference matching PyTorch semantics with the same bf16 matmul
    inputs / f32 accumulation as the kernel."""
    bf16 = jnp.bfloat16

    def mm(a, w):
        return jnp.dot(a.astype(bf16), w.astype(bf16),
                       preferred_element_type=jnp.float32)

    h = jax.nn.relu(mm(x, p["w1"]) + p["b1"])
    mu = mm(h, p["w2"]) + p["b2"]
    log_var = mm(h, p["w3"]) + p["b3"]
    z = mu + eps * jnp.exp(log_var / 2.0)
    h2 = jax.nn.relu(mm(z, p["w4"]) + p["b4"])
    logits = mm(h2, p["w5"]) + p["b5"]
    xr = jax.nn.sigmoid(logits)
    return xr, mu, log_var


if __name__ == "__main__":
    key = jax.random.PRNGKey(0)
    k_param, k_x, k_eps = jax.random.split(key, 3)

    B = 8
    params = init_params(k_param)
    kparams = prepare_params(params)

    # inputs in [0, 1) like MNIST intensities; producer supplies bf16 directly
    x = jax.random.uniform(k_x, (B, IMAGE_SIZE), jnp.float32).astype(jnp.bfloat16)
    # eps generated outside the kernel (deterministic stand-in for torch.randn_like)
    eps = jax.random.normal(k_eps, (B, Z_DIM), jnp.float32)

    xr, mu, log_var = vae_forward(x, eps, kparams)
    jax.block_until_ready((xr, mu, log_var))

    xr_ref, mu_ref, lv_ref = reference_forward(x, eps, params)
    assert xr.shape == (B, IMAGE_SIZE) and xr.dtype == jnp.bfloat16
    assert mu.shape == (B, Z_DIM) and log_var.shape == (B, Z_DIM)
    # bf16 output + approx-EUP reciprocal in sigmoid -> ~4e-3 abs error budget
    assert jnp.allclose(xr.astype(jnp.float32), xr_ref, atol=1e-2, rtol=1e-2), \
        "x_reconst mismatch"
    assert jnp.allclose(mu, mu_ref, atol=1e-4, rtol=1e-4), "mu mismatch"
    assert jnp.allclose(log_var, lv_ref, atol=1e-4, rtol=1e-4), "log_var mismatch"

    print("KERNEL_OK")
</pallas_src>

<mosaic_0001>
module attributes {stable_mosaic.version = 11 : i64} {
  func.func @_vae_kernel(%arg0: i32, %arg1: memref<8x784xbf16, #tpu.memory_space<vmem>>, %arg2: memref<8x128xf32, #tpu.memory_space<vmem>>, %arg3: memref<784x512xbf16, #tpu.memory_space<vmem>>, %arg4: memref<1x512xf32, #tpu.memory_space<vmem>>, %arg5: memref<512x256xbf16, #tpu.memory_space<vmem>>, %arg6: memref<1x256xf32, #tpu.memory_space<vmem>>, %arg7: memref<128x512xbf16, #tpu.memory_space<vmem>>, %arg8: memref<1x512xf32, #tpu.memory_space<vmem>>, %arg9: memref<512x784xbf16, #tpu.memory_space<vmem>>, %arg10: memref<1x784xf32, #tpu.memory_space<vmem>>, %arg11: memref<8x784xbf16, #tpu.memory_space<vmem>>, %arg12: memref<8x20xf32, #tpu.memory_space<vmem>>, %arg13: memref<8x20xf32, #tpu.memory_space<vmem>>) attributes {dimension_semantics = [#tpu.dimension_semantics<parallel>], iteration_bounds = array<i64: 1>, scalar_prefetch = 0 : i64, scratch_operands = 0 : i64, tpu.core_type = #tpu.core_type<tc>, window_params = [{transform_indices = @transform_0, window_bounds = array<i64: 8, 784>}, {transform_indices = @transform_1, window_bounds = array<i64: 8, 128>}, {pipeline_mode = #tpu.pipeline_mode<synchronous>, transform_indices = @transform_2, window_bounds = array<i64: 784, 512>}, {pipeline_mode = #tpu.pipeline_mode<synchronous>, transform_indices = @transform_3, window_bounds = array<i64: 1, 512>}, {pipeline_mode = #tpu.pipeline_mode<synchronous>, transform_indices = @transform_4, window_bounds = array<i64: 512, 256>}, {pipeline_mode = #tpu.pipeline_mode<synchronous>, transform_indices = @transform_5, window_bounds = array<i64: 1, 256>}, {pipeline_mode = #tpu.pipeline_mode<synchronous>, transform_indices = @transform_6, window_bounds = array<i64: 128, 512>}, {pipeline_mode = #tpu.pipeline_mode<synchronous>, transform_indices = @transform_7, window_bounds = array<i64: 1, 512>}, {pipeline_mode = #tpu.pipeline_mode<synchronous>, transform_indices = @transform_8, window_bounds = array<i64: 512, 784>}, {pipeline_mode = #tpu.pipeline_mode<synchronous>, transform_indices = @transform_9, window_bounds = array<i64: 1, 784>}, {transform_indices = @transform_10, window_bounds = array<i64: 8, 784>}, {transform_indices = @transform_11, window_bounds = array<i64: 8, 20>}, {transform_indices = @transform_12, window_bounds = array<i64: 8, 20>}]} {
    %c0 = arith.constant 0 : index
    %c0_0 = arith.constant 0 : index
    %0 = vector.load %arg1[%c0, %c0_0] : memref<8x784xbf16, #tpu.memory_space<vmem>>, vector<8x784xbf16>
    %c0_1 = arith.constant 0 : index
    %c0_2 = arith.constant 0 : index
    %1 = vector.load %arg2[%c0_1, %c0_2] : memref<8x128xf32, #tpu.memory_space<vmem>>, vector<8x128xf32>
    %c0_3 = arith.constant 0 : index
    %c0_4 = arith.constant 0 : index
    %2 = vector.load %arg3[%c0_3, %c0_4] : memref<784x512xbf16, #tpu.memory_space<vmem>>, vector<784x512xbf16>
    %cst = arith.constant dense<0.000000e+00> : vector<8x512xf32>
    %3 = tpu.matmul %0, %2, %cst {dimension_numbers = #tpu.dot_dimension_numbers<[1], [0], [0], [1], [0, 0, 1, 1], [], []>} : vector<8x784xbf16>, vector<784x512xbf16>, vector<8x512xf32> -> vector<8x512xf32>
    %c0_5 = arith.constant 0 : index
    %c0_6 = arith.constant 0 : index
    %4 = vector.load %arg4[%c0_5, %c0_6] : memref<1x512xf32, #tpu.memory_space<vmem>>, vector<1x512xf32>
    %5 = vector.broadcast %4 : vector<1x512xf32> to vector<8x512xf32>
    %6 = arith.addf %3, %5 : vector<8x512xf32>
    %cst_7 = arith.constant 0.000000e+00 : f32
    %7 = vector.broadcast %cst_7 : f32 to vector<8x512xf32>
    %8 = arith.maximumf %6, %7 : vector<8x512xf32>
    %9 = arith.truncf %8 : vector<8x512xf32> to vector<8x512xbf16>
    %c0_8 = arith.constant 0 : index
    %c0_9 = arith.constant 0 : index
    %10 = vector.load %arg5[%c0_8, %c0_9] : memref<512x256xbf16, #tpu.memory_space<vmem>>, vector<512x256xbf16>
    %cst_10 = arith.constant dense<0.000000e+00> : vector<8x256xf32>
    %11 = tpu.matmul %9, %10, %cst_10 {dimension_numbers = #tpu.dot_dimension_numbers<[1], [0], [0], [1], [0, 0, 1, 1], [], []>} : vector<8x512xbf16>, vector<512x256xbf16>, vector<8x256xf32> -> vector<8x256xf32>
    %c0_11 = arith.constant 0 : index
    %c0_12 = arith.constant 0 : index
    %12 = vector.load %arg6[%c0_11, %c0_12] : memref<1x256xf32, #tpu.memory_space<vmem>>, vector<1x256xf32>
    %13 = vector.broadcast %12 : vector<1x256xf32> to vector<8x256xf32>
    %14 = arith.addf %11, %13 : vector<8x256xf32>
    %15 = vector.extract_strided_slice %14 {offsets = [0, 0], sizes = [8, 128], strides = [1, 1]} : vector<8x256xf32> to vector<8x128xf32>
    %16 = vector.extract_strided_slice %14 {offsets = [0, 128], sizes = [8, 128], strides = [1, 1]} : vector<8x256xf32> to vector<8x128xf32>
    %cst_13 = arith.constant 5.000000e-01 : f32
    %17 = vector.broadcast %cst_13 : f32 to vector<8x128xf32>
    %18 = arith.mulf %16, %17 : vector<8x128xf32>
    %19 = math.exp %18 : vector<8x128xf32>
    %20 = arith.mulf %1, %19 : vector<8x128xf32>
    %21 = arith.addf %15, %20 : vector<8x128xf32>
    %22 = arith.truncf %21 : vector<8x128xf32> to vector<8x128xbf16>
    %c0_14 = arith.constant 0 : index
    %c0_15 = arith.constant 0 : index
    %23 = vector.load %arg7[%c0_14, %c0_15] : memref<128x512xbf16, #tpu.memory_space<vmem>>, vector<128x512xbf16>
    %cst_16 = arith.constant dense<0.000000e+00> : vector<8x512xf32>
    %24 = tpu.matmul %22, %23, %cst_16 {dimension_numbers = #tpu.dot_dimension_numbers<[1], [0], [0], [1], [0, 0, 1, 1], [], []>} : vector<8x128xbf16>, vector<128x512xbf16>, vector<8x512xf32> -> vector<8x512xf32>
    %c0_17 = arith.constant 0 : index
    %c0_18 = arith.constant 0 : index
    %25 = vector.load %arg8[%c0_17, %c0_18] : memref<1x512xf32, #tpu.memory_space<vmem>>, vector<1x512xf32>
    %26 = vector.broadcast %25 : vector<1x512xf32> to vector<8x512xf32>
    %27 = arith.addf %24, %26 : vector<8x512xf32>
    %cst_19 = arith.constant 0.000000e+00 : f32
    %28 = vector.broadcast %cst_19 : f32 to vector<8x512xf32>
    %29 = arith.maximumf %27, %28 : vector<8x512xf32>
    %30 = arith.truncf %29 : vector<8x512xf32> to vector<8x512xbf16>
    %c0_20 = arith.constant 0 : index
    %c0_21 = arith.constant 0 : index
    %31 = vector.load %arg9[%c0_20, %c0_21] : memref<512x784xbf16, #tpu.memory_space<vmem>>, vector<512x784xbf16>
    %cst_22 = arith.constant dense<0.000000e+00> : vector<8x784xf32>
    %32 = tpu.matmul %30, %31, %cst_22 {dimension_numbers = #tpu.dot_dimension_numbers<[1], [0], [0], [1], [0, 0, 1, 1], [], []>} : vector<8x512xbf16>, vector<512x784xbf16>, vector<8x784xf32> -> vector<8x784xf32>
    %c0_23 = arith.constant 0 : index
    %c0_24 = arith.constant 0 : index
    %33 = vector.load %arg10[%c0_23, %c0_24] : memref<1x784xf32, #tpu.memory_space<vmem>>, vector<1x784xf32>
    %34 = vector.broadcast %33 : vector<1x784xf32> to vector<8x784xf32>
    %35 = arith.addf %32, %34 : vector<8x784xf32>
    %cst_25 = arith.constant 0.000000e+00 : f32
    %36 = vector.broadcast %cst_25 : f32 to vector<8x784xf32>
    %37 = arith.subf %36, %35 : vector<8x784xf32>
    %38 = math.exp %37 : vector<8x784xf32>
    %cst_26 = arith.constant 1.000000e+00 : f32
    %39 = vector.broadcast %cst_26 : f32 to vector<8x784xf32>
    %40 = arith.addf %39, %38 : vector<8x784xf32>
    %41 = tpu.reciprocal %40 {approx = true} : vector<8x784xf32> -> vector<8x784xf32>
    %42 = arith.truncf %41 : vector<8x784xf32> to vector<8x784xbf16>
    %c0_27 = arith.constant 0 : index
    %c0_28 = arith.constant 0 : index
    %43 = vector.load %arg11[%c0_27, %c0_28] : memref<8x784xbf16, #tpu.memory_space<vmem>>, vector<8x784xbf16>
    tpu.vector_store %arg11[%c0_27, %c0_28], %42 {strides = array<i32>} : memref<8x784xbf16, #tpu.memory_space<vmem>>, vector<8x784xbf16>,
    %44 = vector.extract_strided_slice %15 {offsets = [0, 0], sizes = [8, 20], strides = [1, 1]} : vector<8x128xf32> to vector<8x20xf32>
    %c0_29 = arith.constant 0 : index
    %c0_30 = arith.constant 0 : index
    %45 = vector.load %arg12[%c0_29, %c0_30] : memref<8x20xf32, #tpu.memory_space<vmem>>, vector<8x20xf32>
    tpu.vector_store %arg12[%c0_29, %c0_30], %44 {strides = array<i32>} : memref<8x20xf32, #tpu.memory_space<vmem>>, vector<8x20xf32>,
    %46 = vector.extract_strided_slice %16 {offsets = [0, 0], sizes = [8, 20], strides = [1, 1]} : vector<8x128xf32> to vector<8x20xf32>
    %c0_31 = arith.constant 0 : index
    %c0_32 = arith.constant 0 : index
    %47 = vector.load %arg13[%c0_31, %c0_32] : memref<8x20xf32, #tpu.memory_space<vmem>>, vector<8x20xf32>
    tpu.vector_store %arg13[%c0_31, %c0_32], %46 {strides = array<i32>} : memref<8x20xf32, #tpu.memory_space<vmem>>, vector<8x20xf32>,
    return
  }
  func.func @transform_0(%arg0: i32) -> (i32, i32) {
    %c0_i32 = arith.constant 0 : i32
    %c0_i32_0 = arith.constant 0 : i32
    return %arg0, %c0_i32 : i32, i32
  }
  func.func @transform_1(%arg0: i32) -> (i32, i32) {
    %c0_i32 = arith.constant 0 : i32
    %c0_i32_0 = arith.constant 0 : i32
    return %arg0, %c0_i32 : i32, i32
  }
  func.func @transform_2(%arg0: i32) -> (i32, i32) {
    %c0_i32 = arith.constant 0 : i32
    %c0_i32_0 = arith.constant 0 : i32
    %c0_i32_1 = arith.constant 0 : i32
    return %c0_i32, %c0_i32_0 : i32, i32
  }
  func.func @transform_3(%arg0: i32) -> (i32, i32) {
    %c0_i32 = arith.constant 0 : i32
    %c0_i32_0 = arith.constant 0 : i32
    %c0_i32_1 = arith.constant 0 : i32
    return %c0_i32, %c0_i32_0 : i32, i32
  }
  func.func @transform_4(%arg0: i32) -> (i32, i32) {
    %c0_i32 = arith.constant 0 : i32
    %c0_i32_0 = arith.constant 0 : i32
    %c0_i32_1 = arith.constant 0 : i32
    return %c0_i32, %c0_i32_0 : i32, i32
  }
  func.func @transform_5(%arg0: i32) -> (i32, i32) {
    %c0_i32 = arith.constant 0 : i32
    %c0_i32_0 = arith.constant 0 : i32
    %c0_i32_1 = arith.constant 0 : i32
    return %c0_i32, %c0_i32_0 : i32, i32
  }
  func.func @transform_6(%arg0: i32) -> (i32, i32) {
    %c0_i32 = arith.constant 0 : i32
    %c0_i32_0 = arith.constant 0 : i32
    %c0_i32_1 = arith.constant 0 : i32
    return %c0_i32, %c0_i32_0 : i32, i32
  }
  func.func @transform_7(%arg0: i32) -> (i32, i32) {
    %c0_i32 = arith.constant 0 : i32
    %c0_i32_0 = arith.constant 0 : i32
    %c0_i32_1 = arith.constant 0 : i32
    return %c0_i32, %c0_i32_0 : i32, i32
  }
  func.func @transform_8(%arg0: i32) -> (i32, i32) {
    %c0_i32 = arith.constant 0 : i32
    %c0_i32_0 = arith.constant 0 : i32
    %c0_i32_1 = arith.constant 0 : i32
    return %c0_i32, %c0_i32_0 : i32, i32
  }
  func.func @transform_9(%arg0: i32) -> (i32, i32) {
    %c0_i32 = arith.constant 0 : i32
    %c0_i32_0 = arith.constant 0 : i32
    %c0_i32_1 = arith.constant 0 : i32
    return %c0_i32, %c0_i32_0 : i32, i32
  }
  func.func @transform_10(%arg0: i32) -> (i32, i32) {
    %c0_i32 = arith.constant 0 : i32
    %c0_i32_0 = arith.constant 0 : i32
    return %arg0, %c0_i32 : i32, i32
  }
  func.func @transform_11(%arg0: i32) -> (i32, i32) {
    %c0_i32 = arith.constant 0 : i32
    %c0_i32_0 = arith.constant 0 : i32
    return %arg0, %c0_i32 : i32, i32
  }
  func.func @transform_12(%arg0: i32) -> (i32, i32) {
    %c0_i32 = arith.constant 0 : i32
    %c0_i32_0 = arith.constant 0 : i32
    return %arg0, %c0_i32 : i32, i32
  }
}

</mosaic_0001>

<bundles_post_ra>
// kernel: vae_forward.1
= control target key start
LH: loop header
LB: loop body
LE: loop exit
PB: predicated region body
PF: predicated region fallthrough
CT: control target
= control target key end

     0   :  { %18 = vsyncpa [#allocation3], 0  ;;  %vm1268_vm0 = vcmask 130048   ;;  %s7477_s0 = inlined_call_operand.vmem [shape: bf16[8,784], index: 0, kind: input, shape index: {}]   ;;  %s7478_s1 = inlined_call_operand.vmem [shape: f32[8,128], index: 1, kind: input, shape index: {}]   ;;  %s7479_s2 = inlined_call_operand.vmem [shape: bf16[784,512], index: 2, kind: input, shape index: {}]   ;;  %s7480_s3 = inlined_call_operand.vmem [shape: f32[1,512], index: 3, kind: input, shape index: {}]   ;;  %s7481_s4 = inlined_call_operand.vmem [shape: bf16[512,256], index: 4, kind: input, shape index: {}]   ;;  %s7482_s5 = inlined_call_operand.vmem [shape: f32[1,256], index: 5, kind: input, shape index: {}]   ;;  %s7483_s6 = inlined_call_operand.vmem [shape: bf16[128,512], index: 6, kind: input, shape index: {}]   ;;  %s7484_s7 = inlined_call_operand.vmem [shape: f32[1,512], index: 7, kind: input, shape index: {}]   ;;  %s7485_s8 = inlined_call_operand.vmem [shape: bf16[512,784], index: 8, kind: input, shape index: {}]   ;;  %s7486_s9 = inlined_call_operand.vmem [shape: f32[1,784], index: 9, kind: input, shape index: {}]   ;;  %s7487_s10 = inlined_call_operand.hbm [shape: bf16[8,784], index: 10, kind: output, shape index: {0}]   ;;  %s7488_s11 = inlined_call_operand.hbm [shape: f32[8,20], index: 11, kind: output, shape index: {1}]   ;;  %s7489_s12 = inlined_call_operand.hbm [shape: f32[8,20], index: 12, kind: output, shape index: {2}]  }
   0x1   :  { %v4861_v0 = vld [vmem:[%s7479_s2 + $0xe4] ss:$16 sps:$4 sm:$0xff]   ;;  %v4865_v2 = vld [vmem:[%s7479_s2 + $0xe0] ss:$16 sps:$4 sm:$0xff]   ;;  %v42_v48 = vld [vmem:[%s7477_s0 + $0x8] sm:$0xff] }
   0x2   :  { %v4863_v1 = vld [vmem:[%s7479_s2 + $0x2e4] ss:$16 sps:$4 sm:$0xff]   ;;  %1272 = vmatprep.subr.bf16.mxu0 %v4861_v0  ;;  %v4866_v3 = vld [vmem:[%s7479_s2 + $0x2e0] ss:$16 sps:$4 sm:$0xff]   ;;  %v5942_v51 = vcombine.high %v42_v48, %v42_v48 }
   0x3   :  { %1313 = vmatprep.subr.bf16.mxu1 %v4863_v1  ;;  %v4867_v4 = vld [vmem:[%s7479_s2 + $0xc4] ss:$16 sps:$4 sm:$0xff]   ;;  %1273 = vmatpush1.bf16.msra.mxu0 %v4865_v2  ;;  %v4871_v6 = vld [vmem:[%s7479_s2 + $0xc0] ss:$16 sps:$4 sm:$0xff]  }
   0x4   :  { %1314 = vmatpush1.bf16.msra.mxu1 %v4866_v3  ;;  %v4869_v5 = vld [vmem:[%s7479_s2 + $0x2c4] ss:$16 sps:$4 sm:$0xff]   ;;  %1274 = vmatprep.subr.bf16.mxu0 %v4867_v4  ;;  %v4872_v7 = vld [vmem:[%s7479_s2 + $0x2c0] ss:$16 sps:$4 sm:$0xff]  }
   0x5   :  { %1315 = vmatprep.subr.bf16.mxu1 %v4869_v5  ;;  %v4873_v8 = vld [vmem:[%s7479_s2 + $0xa4] ss:$16 sps:$4 sm:$0xff]   ;;  %v4877_v10 = vld [vmem:[%s7479_s2 + $0xa0] ss:$16 sps:$4 sm:$0xff]   ;;  %1345 = vmatprep.mubr.bf16.mxu1 %v5942_v51 }
   0x6   :  { %v4875_v9 = vld [vmem:[%s7479_s2 + $0x2a4] ss:$16 sps:$4 sm:$0xff]   ;;  %v4878_v11 = vld [vmem:[%s7479_s2 + $0x2a0] ss:$16 sps:$4 sm:$0xff]  }
   0x7   :  { %1275 = vmatpush1.bf16.msra.mxu0 %v4871_v6  ;;  %v4879_v12 = vld [vmem:[%s7479_s2 + $0x84] ss:$16 sps:$4 sm:$0xff]   ;;  %v4883_v14 = vld [vmem:[%s7479_s2 + $0x80] ss:$16 sps:$4 sm:$0xff]  }
   0x8   :  { %1316 = vmatpush1.bf16.msra.mxu1 %v4872_v7  ;;  %1276 = vmatprep.subr.bf16.mxu0 %v4873_v8  ;;  %v4881_v13 = vld [vmem:[%s7479_s2 + $0x284] ss:$16 sps:$4 sm:$0xff]   ;;  %v4884_v15 = vld [vmem:[%s7479_s2 + $0x280] ss:$16 sps:$4 sm:$0xff]   ;;  %v6002_v7 = vcombine.low %v42_v48, %v42_v48  ;;  %v5021_v48 = vld [vmem:[%s7479_s2 + $0x1ec] ss:$16 sps:$4 sm:$0xff]  }
   0x9   :  { %1317 = vmatprep.subr.bf16.mxu1 %v4875_v9  ;;  %v4885_v16 = vld [vmem:[%s7479_s2 + $0x64] ss:$16 sps:$4 sm:$0xff]   ;;  %v4889_v18 = vld [vmem:[%s7479_s2 + $0x60] ss:$16 sps:$4 sm:$0xff]  }
   0xa   :  { %v4887_v17 = vld [vmem:[%s7479_s2 + $0x264] ss:$16 sps:$4 sm:$0xff]   ;;  %v4890_v19 = vld [vmem:[%s7479_s2 + $0x260] ss:$16 sps:$4 sm:$0xff]  }
   0xb   :  { %1277 = vmatpush1.bf16.msra.mxu0 %v4877_v10  ;;  %v4891_v20 = vld [vmem:[%s7479_s2 + $0x44] ss:$16 sps:$4 sm:$0xff]   ;;  %v4895_v22 = vld [vmem:[%s7479_s2 + $0x40] ss:$16 sps:$4 sm:$0xff]  }
   0xc   :  { %1318 = vmatpush1.bf16.msra.mxu1 %v4878_v11  ;;  %1278 = vmatprep.subr.bf16.mxu0 %v4879_v12  ;;  %v4893_v21 = vld [vmem:[%s7479_s2 + $0x244] ss:$16 sps:$4 sm:$0xff]   ;;  %v4896_v23 = vld [vmem:[%s7479_s2 + $0x240] ss:$16 sps:$4 sm:$0xff]   ;;  %v4972_v11 = vld [vmem:[%s7479_s2 + $0xec] ss:$16 sps:$4 sm:$0xff]  }
   0xd   :  { %1319 = vmatprep.subr.bf16.mxu1 %v4881_v13  ;;  %v4897_v24 = vld [vmem:[%s7479_s2 + $0x24] ss:$16 sps:$4 sm:$0xff]   ;;  %v4901_v26 = vld [vmem:[%s7479_s2 + $0x20] ss:$16 sps:$4 sm:$0xff]   ;;  %v5721_v13 = vmov 0  }
   0xe   :  { %v4899_v25 = vld [vmem:[%s7479_s2 + $0x224] ss:$16 sps:$4 sm:$0xff]   ;;  %v4902_v27 = vld [vmem:[%s7479_s2 + $0x220] ss:$16 sps:$4 sm:$0xff]  }
   0xf   :  { %1279 = vmatpush1.bf16.msra.mxu0 %v4883_v14  ;;  %v4903_v28 = vld [vmem:[%s7479_s2 + $0x4] ss:$16 sps:$4 sm:$0xff]   ;;  %v4907_v30 = vld [vmem:[%s7479_s2] ss:$16 sps:$4 sm:$0xff]  }
  0x10   :  { %1320 = vmatpush1.bf16.msra.mxu1 %v4884_v15  ;;  %1280 = vmatprep.subr.bf16.mxu0 %v4885_v16  ;;  %v4905_v29 = vld [vmem:[%s7479_s2 + $0x204] ss:$16 sps:$4 sm:$0xff]   ;;  %v4908_v31 = vld [vmem:[%s7479_s2 + $0x200] ss:$16 sps:$4 sm:$0xff]   ;;  %v4970_v15 = vld [vmem:[%s7479_s2 + $0xe8] ss:$16 sps:$4 sm:$0xff]  }
  0x11   :  { %1321 = vmatprep.subr.bf16.mxu1 %v4887_v17  ;;  %v4909_v32 = vld [vmem:[%s7479_s2 + $0x1e4] ss:$16 sps:$4 sm:$0xff]   ;;  %v4913_v34 = vld [vmem:[%s7479_s2 + $0x1e0] ss:$16 sps:$4 sm:$0xff]   ;;  %v4976_v17 = vld [vmem:[%s7477_s0 + $0x18] ss:$0 sps:$4 sm:$0xff]  }
  0x12   :  { %v4911_v33 = vld [vmem:[%s7479_s2 + $0x3e4] ss:$16 sps:$4 sm:$0xff]   ;;  %v4914_v35 = vld [vmem:[%s7479_s2 + $0x3e0] ss:$16 sps:$4 sm:$0xff]  }
  0x13   :  { %1281 = vmatpush1.bf16.msra.mxu0 %v4889_v18  ;;  %v4915_v36 = vld [vmem:[%s7479_s2 + $0x1c4] ss:$16 sps:$4 sm:$0xff]   ;;  %v4919_v38 = vld [vmem:[%s7479_s2 + $0x1c0] ss:$16 sps:$4 sm:$0xff]   ;;  %v4979_v18 = vld [vmem:[%s7479_s2 + $0xcc] ss:$16 sps:$4 sm:$0xff]  }
  0x14   :  { %1322 = vmatpush1.bf16.msra.mxu1 %v4890_v19  ;;  %1282 = vmatprep.subr.bf16.mxu0 %v4891_v20  ;;  %v4917_v37 = vld [vmem:[%s7479_s2 + $0x3c4] ss:$16 sps:$4 sm:$0xff]   ;;  %v4920_v39 = vld [vmem:[%s7479_s2 + $0x3c0] ss:$16 sps:$4 sm:$0xff]   ;;  %v4977_v20 = vld [vmem:[%s7479_s2 + $0xc8] ss:$16 sps:$4 sm:$0xff]  }
  0x15   :  { %1323 = vmatprep.subr.bf16.mxu1 %v4893_v21  ;;  %v4921_v40 = vld [vmem:[%s7479_s2 + $0x1a4] ss:$16 sps:$4 sm:$0xff]   ;;  %v4925_v42 = vld [vmem:[%s7479_s2 + $0x1a0] ss:$16 sps:$4 sm:$0xff]  }
  0x16   :  { %v4923_v41 = vld [vmem:[%s7479_s2 + $0x3a4] ss:$16 sps:$4 sm:$0xff]   ;;  %v4926_v43 = vld [vmem:[%s7479_s2 + $0x3a0] ss:$16 sps:$4 sm:$0xff]  }
  0x17   :  { %1283 = vmatpush1.bf16.msra.mxu0 %v4895_v22  ;;  %v4927_v44 = vld [vmem:[%s7479_s2 + $0x184] ss:$16 sps:$4 sm:$0xff]   ;;  %v4931_v49 = vld [vmem:[%s7479_s2 + $0x180] ss:$16 sps:$4 sm:$0xff]   ;;  %v4985_v22 = vld [vmem:[%s7479_s2 + $0xac] ss:$16 sps:$4 sm:$0xff]  }
  0x18   :  { %1324 = vmatpush1.bf16.msra.mxu1 %v4896_v23  ;;  %1284 = vmatprep.subr.bf16.mxu0 %v4897_v24  ;;  %v4929_v45 = vld [vmem:[%s7479_s2 + $0x384] ss:$16 sps:$4 sm:$0xff]   ;;  %v4932_v50 = vld [vmem:[%s7479_s2 + $0x380] ss:$16 sps:$4 sm:$0xff]   ;;  %v4983_v24 = vld [vmem:[%s7479_s2 + $0xa8] ss:$16 sps:$4 sm:$0xff]  }
  0x19   :  { %1325 = vmatprep.subr.bf16.mxu1 %v4899_v25  ;;  %v41_v46 = vld [vmem:[%s7477_s0] sm:$0xff] }
  0x1a   :  { %v5931_v47 = vcombine.high %v41_v46, %v41_v46  ;;  %v4933_v52 = vld [vmem:[%s7479_s2 + $0x164] ss:$16 sps:$4 sm:$0xff]   ;;  %v4937_v54 = vld [vmem:[%s7479_s2 + $0x160] ss:$16 sps:$4 sm:$0xff]   ;;  %v6000_v6 = vcombine.low %v41_v46, %v41_v46  ;;  %v5013_v46 = vld [vmem:[%s7479_s2 + $0x8] ss:$16 sps:$4 sm:$0xff]  }
  0x1b   :  { %1285 = vmatpush1.bf16.msra.mxu0 %v4901_v26  ;;  %v4935_v53 = vld [vmem:[%s7479_s2 + $0x364] ss:$16 sps:$4 sm:$0xff]   ;;  %v4938_v55 = vld [vmem:[%s7479_s2 + $0x360] ss:$16 sps:$4 sm:$0xff]   ;;  %v4991_v26 = vld [vmem:[%s7479_s2 + $0x8c] ss:$16 sps:$4 sm:$0xff]  }
  0x1c   :  { %1326 = vmatpush1.bf16.msra.mxu1 %v4902_v27  ;;  %1286 = vmatprep.subr.bf16.mxu0 %v4903_v28  ;;  %v4939_v56 = vld [vmem:[%s7479_s2 + $0x144] ss:$16 sps:$4 sm:$0xff]   ;;  %v4943_v58 = vld [vmem:[%s7479_s2 + $0x140] ss:$16 sps:$4 sm:$0xff]   ;;  %v4989_v28 = vld [vmem:[%s7479_s2 + $0x88] ss:$16 sps:$4 sm:$0xff]  }
  0x1d   :  { %1327 = vmatprep.subr.bf16.mxu1 %v4905_v29  ;;  %1304 = vmatprep.mubr.bf16.mxu0 %v5931_v47  ;;  %v4941_v57 = vld [vmem:[%s7479_s2 + $0x344] ss:$16 sps:$4 sm:$0xff]   ;;  %v4944_v59 = vld [vmem:[%s7479_s2 + $0x340] ss:$16 sps:$4 sm:$0xff]  }
  0x1e   :  { %v4945_v60 = vld [vmem:[%s7479_s2 + $0x124] ss:$16 sps:$4 sm:$0xff]   ;;  %v4949_v62 = vld [vmem:[%s7479_s2 + $0x120] ss:$16 sps:$4 sm:$0xff]  }
  0x1f   :  { %1287 = vmatpush1.bf16.msra.mxu0 %v4907_v30  ;;  %v4947_v61 = vld [vmem:[%s7479_s2 + $0x324] ss:$16 sps:$4 sm:$0xff]   ;;  %v4950_v63 = vld [vmem:[%s7479_s2 + $0x320] ss:$16 sps:$4 sm:$0xff]   ;;  %v4997_v30 = vld [vmem:[%s7479_s2 + $0x6c] ss:$16 sps:$4 sm:$0xff]  }
  0x20   :  { %1328 = vmatpush1.bf16.msra.mxu1 %v4908_v31  ;;  %1288 = vmatprep.subr.bf16.mxu0 %v4909_v32  ;;  %v4951_v0 = vld [vmem:[%s7479_s2 + $0x104] ss:$16 sps:$4 sm:$0xff]   ;;  %v4955_v2 = vld [vmem:[%s7479_s2 + $0x100] ss:$16 sps:$4 sm:$0xff]  }
  0x21   :  { %1329 = vmatprep.subr.bf16.mxu1 %v4911_v33  ;;  %v4953_v1 = vld [vmem:[%s7479_s2 + $0x304] ss:$16 sps:$4 sm:$0xff]   ;;  %v4956_v3 = vld [vmem:[%s7479_s2 + $0x300] ss:$16 sps:$4 sm:$0xff]  }
  0x22   :  { %v4963_v4 = vld [vmem:[%s7479_s2 + $0x4e4] ss:$16 sps:$4 sm:$0xff]   ;;  %v4961_v8 = vld [vmem:[%s7479_s2 + $0x4e0] ss:$16 sps:$4 sm:$0xff]  }
  0x23   :  { %1289 = vmatpush2.bf16.msra.mxu0 %v4913_v34  ;;  %v4966_v5 = vld [vmem:[%s7479_s2 + $0x604] ss:$16 sps:$4 sm:$0xff]   ;;  %v4964_v9 = vld [vmem:[%s7479_s2 + $0x600] ss:$16 sps:$4 sm:$0xff]   ;;  %v4995_v34 = vld [vmem:[%s7479_s2 + $0x68] ss:$16 sps:$4 sm:$0xff]  }
  0x24   :  { %1330 = vmatpush2.bf16.msra.mxu1 %v4914_v35  ;;  %1290 = vmatprep.subr.bf16.mxu0 %v4915_v36  ;;  %v4969_v10 = vld [vmem:[%s7479_s2 + $0x4c4] ss:$16 sps:$4 sm:$0xff]   ;;  %v4967_v12 = vld [vmem:[%s7479_s2 + $0x4c0] ss:$16 sps:$4 sm:$0xff]   ;;  %v5003_v36 = vld [vmem:[%s7479_s2 + $0x4c] ss:$16 sps:$4 sm:$0xff]  }
  0x25   :  { %1331 = vmatprep.subr.bf16.mxu1 %v4917_v37  ;;  %v4975_v14 = vld [vmem:[%s7479_s2 + $0x4a4] ss:$16 sps:$4 sm:$0xff]   ;;  %v4973_v16 = vld [vmem:[%s7479_s2 + $0x4a0] ss:$16 sps:$4 sm:$0xff]  }
  0x26   :  { %v4982_v19 = vld [vmem:[%s7479_s2 + $0x484] ss:$16 sps:$4 sm:$0xff]   ;;  %v4980_v21 = vld [vmem:[%s7479_s2 + $0x480] ss:$16 sps:$4 sm:$0xff]  }
  0x27   :  { %1291 = vmatpush2.bf16.msra.mxu0 %v4919_v38  ;;  %v4988_v23 = vld [vmem:[%s7479_s2 + $0x464] ss:$16 sps:$4 sm:$0xff]   ;;  %v4986_v25 = vld [vmem:[%s7479_s2 + $0x460] ss:$16 sps:$4 sm:$0xff]   ;;  %v5001_v38 = vld [vmem:[%s7479_s2 + $0x48] ss:$16 sps:$4 sm:$0xff]  }
  0x28   :  { %1332 = vmatpush2.bf16.msra.mxu1 %v4920_v39  ;;  %1292 = vmatprep.subr.bf16.mxu0 %v4921_v40  ;;  %v4994_v27 = vld [vmem:[%s7479_s2 + $0x444] ss:$16 sps:$4 sm:$0xff]   ;;  %v4992_v29 = vld [vmem:[%s7479_s2 + $0x440] ss:$16 sps:$4 sm:$0xff]   ;;  %v5009_v40 = vld [vmem:[%s7479_s2 + $0x2c] ss:$16 sps:$4 sm:$0xff]  }
  0x29   :  { %1333 = vmatprep.subr.bf16.mxu1 %v4923_v41  ;;  %v5000_v31 = vld [vmem:[%s7479_s2 + $0x424] ss:$16 sps:$4 sm:$0xff]   ;;  %v4998_v35 = vld [vmem:[%s7479_s2 + $0x420] ss:$16 sps:$4 sm:$0xff]  }
  0x2a   :  { %v6081_v32 = vld [vmem:[%s7477_s0 + $0x10] sm:$0xff] }
  0x2b   :  { %1293 = vmatpush2.bf16.msra.mxu0 %v4925_v42  ;;  %v6085_v33 = vcombine.high %v6081_v32, %v6081_v32  ;;  %v5006_v37 = vld [vmem:[%s7479_s2 + $0x404] ss:$16 sps:$4 sm:$0xff]   ;;  %v5004_v39 = vld [vmem:[%s7479_s2 + $0x400] ss:$16 sps:$4 sm:$0xff]   ;;  %v5007_v42 = vld [vmem:[%s7479_s2 + $0x28] ss:$16 sps:$4 sm:$0xff]  }
  0x2c   :  { %1334 = vmatpush2.bf16.msra.mxu1 %v4926_v43  ;;  %1294 = vmatprep.subr.bf16.mxu0 %v4927_v44  ;;  %v5012_v41 = vld [vmem:[%s7479_s2 + $0x5e4] ss:$16 sps:$4 sm:$0xff]   ;;  %v5010_v43 = vld [vmem:[%s7479_s2 + $0x5e0] ss:$16 sps:$4 sm:$0xff]   ;;  %v5015_v44 = vld [vmem:[%s7479_s2 + $0xc] ss:$16 sps:$4 sm:$0xff]  }
  0x2d   :  { %1335 = vmatprep.subr.bf16.mxu1 %v4929_v45  ;;  %v5018_v45 = vld [vmem:[%s7479_s2 + $0x5c4] ss:$16 sps:$4 sm:$0xff]  }
  0x2f   :  { %1295 = vmatpush2.bf16.msra.mxu0 %v4931_v49  ;;  %v5024_v49 = vld [vmem:[%s7479_s2 + $0x5a4] ss:$16 sps:$4 sm:$0xff]  }
  0x30   :  { %1336 = vmatpush2.bf16.msra.mxu1 %v4932_v50  ;;  %1296 = vmatprep.subr.bf16.mxu0 %v4933_v52  ;;  %v5019_v50 = vld [vmem:[%s7479_s2 + $0x1e8] ss:$16 sps:$4 sm:$0xff]   ;;  %v5022_v52 = vld [vmem:[%s7479_s2 + $0x5a0] ss:$16 sps:$4 sm:$0xff]  }
  0x31   :  { %1337 = vmatprep.subr.bf16.mxu1 %v4935_v53  ;;  %v5027_v53 = vld [vmem:[%s7479_s2 + $0x1cc] ss:$16 sps:$4 sm:$0xff]  }
  0x33   :  { %1297 = vmatpush2.bf16.msra.mxu0 %v4937_v54  ;;  %v5030_v54 = vld [vmem:[%s7479_s2 + $0x584] ss:$16 sps:$4 sm:$0xff]  }
  0x34   :  { %1338 = vmatpush2.bf16.msra.mxu1 %v4938_v55  ;;  %1298 = vmatprep.subr.bf16.mxu0 %v4939_v56  ;;  %v5025_v55 = vld [vmem:[%s7479_s2 + $0x1c8] ss:$16 sps:$4 sm:$0xff]   ;;  %v5028_v56 = vld [vmem:[%s7479_s2 + $0x580] ss:$16 sps:$4 sm:$0xff]  }
  0x35   :  { %1339 = vmatprep.subr.bf16.mxu1 %v4941_v57  ;;  %v5033_v57 = vld [vmem:[%s7479_s2 + $0x1ac] ss:$16 sps:$4 sm:$0xff]  }
  0x37   :  { %1299 = vmatpush2.bf16.msra.mxu0 %v4943_v58  ;;  %v5036_v58 = vld [vmem:[%s7479_s2 + $0x564] ss:$16 sps:$4 sm:$0xff]  }
  0x38   :  { %1340 = vmatpush2.bf16.msra.mxu1 %v4944_v59  ;;  %1300 = vmatprep.subr.bf16.mxu0 %v4945_v60  ;;  %v5031_v59 = vld [vmem:[%s7479_s2 + $0x1a8] ss:$16 sps:$4 sm:$0xff]   ;;  %v5034_v60 = vld [vmem:[%s7479_s2 + $0x560] ss:$16 sps:$4 sm:$0xff]  }
  0x39   :  { %1341 = vmatprep.subr.bf16.mxu1 %v4947_v61  ;;  %v5039_v61 = vld [vmem:[%s7479_s2 + $0x18c] ss:$16 sps:$4 sm:$0xff]  }
  0x3b   :  { %1301 = vmatpush2.bf16.msra.mxu0 %v4949_v62  ;;  %v5042_v62 = vld [vmem:[%s7479_s2 + $0x544] ss:$16 sps:$4 sm:$0xff]  }
  0x3c   :  { %1342 = vmatpush2.bf16.msra.mxu1 %v4950_v63  ;;  %1302 = vmatprep.subr.bf16.mxu0 %v4951_v0  ;;  %v5037_v63 = vld [vmem:[%s7479_s2 + $0x188] ss:$16 sps:$4 sm:$0xff]   ;;  %v5040_v0 = vld [vmem:[%s7479_s2 + $0x540] ss:$16 sps:$4 sm:$0xff]  }
  0x3d   :  { %1343 = vmatprep.subr.bf16.mxu1 %v4953_v1  ;;  %v5045_v1 = vld [vmem:[%s7479_s2 + $0x16c] ss:$16 sps:$4 sm:$0xff]  }
  0x3f   :  { %1303 = vmatpush2.bf16.msra.mxu0 %v4955_v2  ;;  %v5048_v2 = vld [vmem:[%s7479_s2 + $0x524] ss:$16 sps:$4 sm:$0xff]  }
  0x40   :  { %1344 = vmatpush2.bf16.msra.mxu1 %v4956_v3  ;;  %1354 = vmatprep.subr.bf16.mxu0 %v4963_v4  ;;  %v5043_v3 = vld [vmem:[%s7479_s2 + $0x168] ss:$16 sps:$4 sm:$0xff]   ;;  %v5046_v4 = vld [vmem:[%s7479_s2 + $0x520] ss:$16 sps:$4 sm:$0xff]  }
  0x41   :  { %1409 = vmatprep.subr.bf16.mxu1 %v4966_v5  ;;  %v5051_v5 = vld [vmem:[%s7479_s2 + $0x14c] ss:$16 sps:$4 sm:$0xff]  }
  0x42   :  { %1305 = vmatmul.mubr.bf16.vlgmr.msra.gmra.mxu0 %v6000_v6 }
  0x43   :  { %1346 = vmatmul.mubr.bf16.vlgmr.msra.gmra.mxu1 %v6002_v7  ;;  %1355 = vmatpush1.bf16.msra.mxu0 %v4961_v8  ;;  %v5054_v8 = vld [vmem:[%s7479_s2 + $0x504] ss:$16 sps:$4 sm:$0xff]  }
  0x44   :  { %1410 = vmatpush1.bf16.msra.mxu1 %v4964_v9  ;;  %1356 = vmatprep.subr.bf16.mxu0 %v4969_v10  ;;  %v5049_v9 = vld [vmem:[%s7479_s2 + $0x148] ss:$16 sps:$4 sm:$0xff]   ;;  %v5052_v10 = vld [vmem:[%s7479_s2 + $0x500] ss:$16 sps:$4 sm:$0xff]  }
  0x45   :  { %1427 = vmatprep.mubr.bf16.mxu1 %v5721_v13  ;;  %1436 = vmatprep.subr.bf16.mxu1 %v4972_v11  ;;  %v5059_v11 = vld [vmem:[%s7479_s2 + $0x12c] ss:$16 sps:$4 sm:$0xff]  }
  0x46   :  { %1386 = vmatprep.mubr.bf16.mxu0 %v6085_v33 }
  0x47   :  { %1357 = vmatpush1.bf16.msra.mxu0 %v4967_v12  ;;  %v5062_v12 = vld [vmem:[%s7479_s2 + $0x2ec] ss:$16 sps:$4 sm:$0xff]  }
  0x48   :  { %1358 = vmatprep.subr.bf16.mxu0 %v4975_v14  ;;  %v6210_v14 = vcombine.low %v6081_v32, %v6081_v32  ;;  %v5092_v32 = vld [vmem:[%s7479_s2 + $0x24c] ss:$16 sps:$4 sm:$0xff]  }
  0x4b   :  { %4483 = vmatmul.mubr.msk.bf16.vlgmr.msra.gmra.mxu1 %vm1268_vm0, %v4976_v17  ;;  %1359 = vmatpush1.bf16.msra.mxu0 %v4973_v16  ;;  %v5060_v16 = vld [vmem:[%s7479_s2 + $0x2e8] ss:$16 sps:$4 sm:$0xff]   ;;  %v5065_v17 = vld [vmem:[%s7479_s2 + $0x10c] ss:$16 sps:$4 sm:$0xff]  }
  0x4c   :  { %1437 = vmatpush1.bf16.msra.mxu1 %v4970_v15  ;;  %1360 = vmatprep.subr.bf16.mxu0 %v4982_v19  ;;  %v5057_v15 = vld [vmem:[%s7479_s2 + $0x128] ss:$16 sps:$4 sm:$0xff]  }
  0x4d   :  { %1438 = vmatprep.subr.bf16.mxu1 %v4979_v18  ;;  %1468 = vmatprep.mubr.bf16.mxu1 %v5931_v47  ;;  %v5016_v47 = vld [vmem:[%s7479_s2 + $0x5c0] ss:$16 sps:$4 sm:$0xff]   ;;  %v5068_v18 = vld [vmem:[%s7479_s2 + $0x2cc] ss:$16 sps:$4 sm:$0xff]   ;;  %v5063_v19 = vld [vmem:[%s7479_s2 + $0x108] ss:$16 sps:$4 sm:$0xff]  }
  0x4f   :  { %1361 = vmatpush1.bf16.msra.mxu0 %v4980_v21  ;;  %v5071_v21 = vld [vmem:[%s7479_s2 + $0x4ec] ss:$16 sps:$4 sm:$0xff]  }
  0x50   :  { %1439 = vmatpush1.bf16.msra.mxu1 %v4977_v20  ;;  %1362 = vmatprep.subr.bf16.mxu0 %v4988_v23  ;;  %v5066_v20 = vld [vmem:[%s7479_s2 + $0x2c8] ss:$16 sps:$4 sm:$0xff]  }
  0x51   :  { %1440 = vmatprep.subr.bf16.mxu1 %v4985_v22  ;;  %v5074_v22 = vld [vmem:[%s7479_s2 + $0x2ac] ss:$16 sps:$4 sm:$0xff]   ;;  %v5069_v23 = vld [vmem:[%s7479_s2 + $0x4e8] ss:$16 sps:$4 sm:$0xff]  }
  0x53   :  { %1363 = vmatpush1.bf16.msra.mxu0 %v4986_v25  ;;  %v5077_v25 = vld [vmem:[%s7479_s2 + $0x4cc] ss:$16 sps:$4 sm:$0xff]  }
  0x54   :  { %1441 = vmatpush1.bf16.msra.mxu1 %v4983_v24  ;;  %1364 = vmatprep.subr.bf16.mxu0 %v4994_v27  ;;  %v5072_v24 = vld [vmem:[%s7479_s2 + $0x2a8] ss:$16 sps:$4 sm:$0xff]  }
  0x55   :  { %1442 = vmatprep.subr.bf16.mxu1 %v4991_v26  ;;  %v5080_v26 = vld [vmem:[%s7479_s2 + $0x28c] ss:$16 sps:$4 sm:$0xff]   ;;  %v5075_v27 = vld [vmem:[%s7479_s2 + $0x4c8] ss:$16 sps:$4 sm:$0xff]  }
  0x57   :  { %1365 = vmatpush1.bf16.msra.mxu0 %v4992_v29  ;;  %v5086_v29 = vld [vmem:[%s7479_s2 + $0x26c] ss:$16 sps:$4 sm:$0xff]  }
  0x58   :  { %1443 = vmatpush1.bf16.msra.mxu1 %v4989_v28  ;;  %1366 = vmatprep.subr.bf16.mxu0 %v5000_v31  ;;  %v5083_v28 = vld [vmem:[%s7479_s2 + $0x4ac] ss:$16 sps:$4 sm:$0xff]  }
  0x59   :  { %1444 = vmatprep.subr.bf16.mxu1 %v4997_v30  ;;  %v5081_v30 = vld [vmem:[%s7479_s2 + $0x4a8] ss:$16 sps:$4 sm:$0xff]   ;;  %v5089_v31 = vld [vmem:[%s7479_s2 + $0x48c] ss:$16 sps:$4 sm:$0xff]  }
  0x5b   :  { %1367 = vmatpush1.bf16.msra.mxu0 %v4998_v35  ;;  %v5095_v35 = vld [vmem:[%s7479_s2 + $0x46c] ss:$16 sps:$4 sm:$0xff]  }
  0x5c   :  { %1445 = vmatpush1.bf16.msra.mxu1 %v4995_v34  ;;  %1368 = vmatprep.subr.bf16.mxu0 %v5006_v37  ;;  %v5090_v34 = vld [vmem:[%s7479_s2 + $0x248] ss:$16 sps:$4 sm:$0xff]  }
  0x5d   :  { %1446 = vmatprep.subr.bf16.mxu1 %v5003_v36  ;;  %v5098_v36 = vld [vmem:[%s7479_s2 + $0x22c] ss:$16 sps:$4 sm:$0xff]   ;;  %v5093_v37 = vld [vmem:[%s7479_s2 + $0x468] ss:$16 sps:$4 sm:$0xff]  }
  0x5f   :  { %1369 = vmatpush1.bf16.msra.mxu0 %v5004_v39  ;;  %v5101_v39 = vld [vmem:[%s7479_s2 + $0x44c] ss:$16 sps:$4 sm:$0xff]  }
  0x60   :  { %1447 = vmatpush1.bf16.msra.mxu1 %v5001_v38  ;;  %1370 = vmatprep.subr.bf16.mxu0 %v5012_v41  ;;  %v5096_v38 = vld [vmem:[%s7479_s2 + $0x228] ss:$16 sps:$4 sm:$0xff]  }
  0x61   :  { %1448 = vmatprep.subr.bf16.mxu1 %v5009_v40  ;;  %v5104_v40 = vld [vmem:[%s7479_s2 + $0x20c] ss:$16 sps:$4 sm:$0xff]   ;;  %v5099_v41 = vld [vmem:[%s7479_s2 + $0x448] ss:$16 sps:$4 sm:$0xff]  }
  0x63   :  { %1371 = vmatpush2.bf16.msra.mxu0 %v5010_v43  ;;  %v5107_v43 = vld [vmem:[%s7479_s2 + $0x42c] ss:$16 sps:$4 sm:$0xff]  }
  0x64   :  { %1449 = vmatpush1.bf16.msra.mxu1 %v5007_v42  ;;  %1372 = vmatprep.subr.bf16.mxu0 %v5018_v45  ;;  %v5102_v42 = vld [vmem:[%s7479_s2 + $0x208] ss:$16 sps:$4 sm:$0xff]  }
  0x65   :  { %1450 = vmatprep.subr.bf16.mxu1 %v5015_v44  ;;  %v5110_v44 = vld [vmem:[%s7479_s2 + $0x3ec] ss:$16 sps:$4 sm:$0xff]   ;;  %v5105_v45 = vld [vmem:[%s7479_s2 + $0x428] ss:$16 sps:$4 sm:$0xff]  }
  0x67   :  { %1373 = vmatpush2.bf16.msra.mxu0 %v5016_v47  ;;  %v5113_v47 = vld [vmem:[%s7479_s2 + $0x40c] ss:$16 sps:$4 sm:$0xff]  }
  0x68   :  { %1451 = vmatpush1.bf16.msra.mxu1 %v5013_v46  ;;  %1374 = vmatprep.subr.bf16.mxu0 %v5024_v49  ;;  %v5108_v46 = vld [vmem:[%s7479_s2 + $0x3e8] ss:$16 sps:$4 sm:$0xff]  }
  0x69   :  { %1452 = vmatprep.subr.bf16.mxu1 %v5021_v48  ;;  %v5116_v48 = vld [vmem:[%s7479_s2 + $0x3cc] ss:$16 sps:$4 sm:$0xff]   ;;  %v5111_v49 = vld [vmem:[%s7479_s2 + $0x408] ss:$16 sps:$4 sm:$0xff]  }
  0x6b   :  { %1375 = vmatpush2.bf16.msra.mxu0 %v5022_v52  ;;  %v5119_v52 = vld [vmem:[%s7479_s2 + $0x5ec] ss:$16 sps:$4 sm:$0xff]  }
  0x6c   :  { %1453 = vmatpush2.bf16.msra.mxu1 %v5019_v50  ;;  %1376 = vmatprep.subr.bf16.mxu0 %v5030_v54  ;;  %v5114_v50 = vld [vmem:[%s7479_s2 + $0x3c8] ss:$16 sps:$4 sm:$0xff]  }
  0x6d   :  { %1454 = vmatprep.subr.bf16.mxu1 %v5027_v53  ;;  %v5122_v53 = vld [vmem:[%s7479_s2 + $0x3ac] ss:$16 sps:$4 sm:$0xff]   ;;  %v5117_v54 = vld [vmem:[%s7479_s2 + $0x5e8] ss:$16 sps:$4 sm:$0xff]  }
  0x6f   :  { %1377 = vmatpush2.bf16.msra.mxu0 %v5028_v56  ;;  %v5125_v56 = vld [vmem:[%s7479_s2 + $0x5cc] ss:$16 sps:$4 sm:$0xff]  }
  0x70   :  { %1455 = vmatpush2.bf16.msra.mxu1 %v5025_v55  ;;  %1378 = vmatprep.subr.bf16.mxu0 %v5036_v58  ;;  %v5120_v55 = vld [vmem:[%s7479_s2 + $0x3a8] ss:$16 sps:$4 sm:$0xff]  }
  0x71   :  { %1456 = vmatprep.subr.bf16.mxu1 %v5033_v57  ;;  %v5128_v57 = vld [vmem:[%s7479_s2 + $0x38c] ss:$16 sps:$4 sm:$0xff]   ;;  %v5123_v58 = vld [vmem:[%s7479_s2 + $0x5c8] ss:$16 sps:$4 sm:$0xff]  }
  0x73   :  { %1379 = vmatpush2.bf16.msra.mxu0 %v5034_v60  ;;  %v5131_v60 = vld [vmem:[%s7479_s2 + $0x5ac] ss:$16 sps:$4 sm:$0xff]  }
  0x74   :  { %1457 = vmatpush2.bf16.msra.mxu1 %v5031_v59  ;;  %1380 = vmatprep.subr.bf16.mxu0 %v5042_v62  ;;  %v5126_v59 = vld [vmem:[%s7479_s2 + $0x388] ss:$16 sps:$4 sm:$0xff]  }
  0x75   :  { %1458 = vmatprep.subr.bf16.mxu1 %v5039_v61  ;;  %v5134_v61 = vld [vmem:[%s7479_s2 + $0x36c] ss:$16 sps:$4 sm:$0xff]   ;;  %v5129_v62 = vld [vmem:[%s7479_s2 + $0x5a8] ss:$16 sps:$4 sm:$0xff]  }
  0x77   :  { %1381 = vmatpush2.bf16.msra.mxu0 %v5040_v0  ;;  %v5137_v0 = vld [vmem:[%s7479_s2 + $0x58c] ss:$16 sps:$4 sm:$0xff]  }
  0x78   :  { %1459 = vmatpush2.bf16.msra.mxu1 %v5037_v63  ;;  %1382 = vmatprep.subr.bf16.mxu0 %v5048_v2  ;;  %v5132_v63 = vld [vmem:[%s7479_s2 + $0x368] ss:$16 sps:$4 sm:$0xff]  }
  0x79   :  { %1460 = vmatprep.subr.bf16.mxu1 %v5045_v1  ;;  %v5140_v1 = vld [vmem:[%s7479_s2 + $0x34c] ss:$16 sps:$4 sm:$0xff]   ;;  %v5135_v2 = vld [vmem:[%s7479_s2 + $0x588] ss:$16 sps:$4 sm:$0xff]  }
  0x7b   :  { %1383 = vmatpush2.bf16.msra.mxu0 %v5046_v4  ;;  %v5143_v4 = vld [vmem:[%s7479_s2 + $0x56c] ss:$16 sps:$4 sm:$0xff]  }
  0x7c   :  { %1461 = vmatpush2.bf16.msra.mxu1 %v5043_v3  ;;  %1384 = vmatprep.subr.bf16.mxu0 %v5054_v8  ;;  %v5138_v3 = vld [vmem:[%s7479_s2 + $0x348] ss:$16 sps:$4 sm:$0xff]  }
  0x7d   :  { %1462 = vmatprep.subr.bf16.mxu1 %v5051_v5  ;;  %v5146_v5 = vld [vmem:[%s7479_s2 + $0x32c] ss:$16 sps:$4 sm:$0xff]   ;;  %v5141_v8 = vld [vmem:[%s7479_s2 + $0x568] ss:$16 sps:$4 sm:$0xff]  }
  0x7f   :  { %1385 = vmatpush2.bf16.msra.mxu0 %v5052_v10  ;;  %v5149_v10 = vld [vmem:[%s7479_s2 + $0x54c] ss:$16 sps:$4 sm:$0xff]  }
  0x80   :  { %1463 = vmatpush2.bf16.msra.mxu1 %v5049_v9  ;;  %1477 = vmatprep.subr.bf16.mxu0 %v5062_v12  ;;  %v5144_v9 = vld [vmem:[%s7479_s2 + $0x328] ss:$16 sps:$4 sm:$0xff]  }
  0x81   :  { %1464 = vmatprep.subr.bf16.mxu1 %v5059_v11  ;;  %v5152_v11 = vld [vmem:[%s7479_s2 + $0x30c] ss:$16 sps:$4 sm:$0xff]   ;;  %v5147_v12 = vld [vmem:[%s7479_s2 + $0x548] ss:$16 sps:$4 sm:$0xff]  }
  0x82   :  { %1387 = vmatmul.mubr.bf16.vlgmr.msra.gmra.mxu0 %v6210_v14 }
  0x83   :  { %1478 = vmatpush1.bf16.msra.mxu0 %v5060_v16  ;;  %1509 = vmatprep.mubr.bf16.mxu0 %v5942_v51  ;;  %v5078_v51 = vld [vmem:[%s7479_s2 + $0x288] ss:$16 sps:$4 sm:$0xff]   ;;  %v5155_v16 = vld [vmem:[%s7479_s2 + $0x52c] ss:$16 sps:$4 sm:$0xff]  }
  0x84   :  { %1465 = vmatpush2.bf16.msra.mxu1 %v5057_v15  ;;  %1479 = vmatprep.subr.bf16.mxu0 %v5068_v18  ;;  %v5150_v15 = vld [vmem:[%s7479_s2 + $0x308] ss:$16 sps:$4 sm:$0xff]  }
  0x85   :  { %1466 = vmatprep.subr.bf16.mxu1 %v5065_v17  ;;  %v5158_v17 = vld [vmem:[%s7479_s2 + $0x60c] ss:$16 sps:$4 sm:$0xff]   ;;  %v5153_v18 = vld [vmem:[%s7479_s2 + $0x528] ss:$16 sps:$4 sm:$0xff]  }
  0x87   :  { %1480 = vmatpush1.bf16.msra.mxu0 %v5066_v20  ;;  %v5161_v20 = vld [vmem:[%s7479_s2 + $0x50c] ss:$16 sps:$4 sm:$0xff]  }
  0x88   :  { %1467 = vmatpush2.bf16.msra.mxu1 %v5063_v19  ;;  %1481 = vmatprep.subr.bf16.mxu0 %v5074_v22  ;;  %v5156_v19 = vld [vmem:[%s7479_s2 + $0x608] ss:$16 sps:$4 sm:$0xff]  }
  0x89   :  { %1518 = vmatprep.subr.bf16.mxu1 %v5071_v21  ;;  %v5164_v21 = vld [vmem:[%s7481_s4 + $0x74] ss:$8 sps:$4 sm:$0xff]   ;;  %v5159_v22 = vld [vmem:[%s7479_s2 + $0x508] ss:$16 sps:$4 sm:$0xff]  }
  0x8b   :  { %1469 = vmatmul.mubr.bf16.vlgmr.msra.gmra.mxu1 %v6000_v6  ;;  %1482 = vmatpush1.bf16.msra.mxu0 %v5072_v24  ;;  %v5084_v6 = vld [vmem:[%s7479_s2 + $0x268] ss:$16 sps:$4 sm:$0xff]   ;;  %v5167_v24 = vld [vmem:[%s7481_s4 + $0x64] ss:$8 sps:$4 sm:$0xff]  }
  0x8c   :  { %1519 = vmatpush1.bf16.msra.mxu1 %v5069_v23  ;;  %1483 = vmatprep.subr.bf16.mxu0 %v5080_v26  ;;  %v5162_v23 = vld [vmem:[%s7481_s4 + $0x70] ss:$8 sps:$4 sm:$0xff]   ;;  %v5170_v26 = vld [vmem:[%s7481_s4 + $0x54] ss:$8 sps:$4 sm:$0xff]  }
  0x8d   :  { %1520 = vmatprep.subr.bf16.mxu1 %v5077_v25  ;;  %1550 = vmatprep.mubr.bf16.mxu1 %v6085_v33  ;;  %v5087_v33 = vld [vmem:[%s7479_s2 + $0x488] ss:$16 sps:$4 sm:$0xff]  }
  0x8e   :  { %v5656_v25 = vld [vmem:[%s7477_s0 + $0x18] ss:$0 sps:$4 sm:$0xff]  }
  0x8f   :  { %1484 = vmatpush1.bf16.msra.mxu0 %v5078_v51  ;;  %v5210_v51 = vld [vmem:[%s7481_s4 + $0x170] ss:$8 sps:$4 sm:$0xff]  }
  0x90   :  { %1521 = vmatpush1.bf16.msra.mxu1 %v5075_v27  ;;  %1485 = vmatprep.subr.bf16.mxu0 %v5086_v29  ;;  %v5168_v27 = vld [vmem:[%s7481_s4 + $0x50] ss:$8 sps:$4 sm:$0xff]   ;;  %v5215_v29 = vld [vmem:[%s7481_s4 + $0x164] ss:$8 sps:$4 sm:$0xff]  }
  0x91   :  { %1522 = vmatprep.subr.bf16.mxu1 %v5083_v28  ;;  %v5212_v28 = vld [vmem:[%s7481_s4 + $0x174] ss:$8 sps:$4 sm:$0xff]  }
  0x93   :  { %1486 = vmatpush1.bf16.msra.mxu0 %v5084_v6  ;;  %v5213_v6 = vld [vmem:[%s7481_s4 + $0x160] ss:$8 sps:$4 sm:$0xff]  }
  0x94   :  { %1523 = vmatpush1.bf16.msra.mxu1 %v5081_v30  ;;  %1487 = vmatprep.subr.bf16.mxu0 %v5092_v32  ;;  %v5171_v30 = vld [vmem:[%s7481_s4 + $0x40] ss:$8 sps:$4 sm:$0xff]   ;;  %v5218_v32 = vld [vmem:[%s7481_s4 + $0x154] ss:$8 sps:$4 sm:$0xff]  }
  0x95   :  { %1524 = vmatprep.subr.bf16.mxu1 %v5089_v31  ;;  %v5176_v31 = vld [vmem:[%s7481_s4 + $0x34] ss:$8 sps:$4 sm:$0xff]  }
  0x97   :  { %1488 = vmatpush1.bf16.msra.mxu0 %v5090_v34  ;;  %v5179_v34 = vld [vmem:[%s7481_s4 + $0x24] ss:$8 sps:$4 sm:$0xff]  }
  0x98   :  { %1525 = vmatpush1.bf16.msra.mxu1 %v5087_v33  ;;  %1489 = vmatprep.subr.bf16.mxu0 %v5098_v36  ;;  %v5174_v33 = vld [vmem:[%s7481_s4 + $0x30] ss:$8 sps:$4 sm:$0xff]   ;;  %v5221_v36 = vld [vmem:[%s7481_s4 + $0x144] ss:$8 sps:$4 sm:$0xff]  }
  0x99   :  { %1526 = vmatprep.subr.bf16.mxu1 %v5095_v35  ;;  %v5216_v35 = vld [vmem:[%s7481_s4 + $0x150] ss:$8 sps:$4 sm:$0xff]  }
  0x9b   :  { %1490 = vmatpush1.bf16.msra.mxu0 %v5096_v38  ;;  %v5219_v38 = vld [vmem:[%s7481_s4 + $0x140] ss:$8 sps:$4 sm:$0xff]  }
  0x9c   :  { %1527 = vmatpush1.bf16.msra.mxu1 %v5093_v37  ;;  %1491 = vmatprep.subr.bf16.mxu0 %v5104_v40  ;;  %v5177_v37 = vld [vmem:[%s7481_s4 + $0x20] ss:$8 sps:$4 sm:$0xff]   ;;  %v5224_v40 = vld [vmem:[%s7481_s4 + $0x134] ss:$8 sps:$4 sm:$0xff]  }
  0x9d   :  { %1528 = vmatprep.subr.bf16.mxu1 %v5101_v39  ;;  %v5182_v39 = vld [vmem:[%s7481_s4 + $0x14] ss:$8 sps:$4 sm:$0xff]  }
  0x9f   :  { %1492 = vmatpush1.bf16.msra.mxu0 %v5102_v42  ;;  %v5222_v42 = vld [vmem:[%s7481_s4 + $0x130] ss:$8 sps:$4 sm:$0xff]  }
  0xa0   :  { %1529 = vmatpush1.bf16.msra.mxu1 %v5099_v41  ;;  %1493 = vmatprep.subr.bf16.mxu0 %v5110_v44  ;;  %v5180_v41 = vld [vmem:[%s7481_s4 + $0x10] ss:$8 sps:$4 sm:$0xff]   ;;  %v5227_v44 = vld [vmem:[%s7481_s4 + $0x124] ss:$8 sps:$4 sm:$0xff]  }
  0xa1   :  { %1530 = vmatprep.subr.bf16.mxu1 %v5107_v43  ;;  %v5185_v43 = vld [vmem:[%s7481_s4 + $0x4] ss:$8 sps:$4 sm:$0xff]  }
  0xa3   :  { %1494 = vmatpush2.bf16.msra.mxu0 %v5108_v46  ;;  %v5225_v46 = vld [vmem:[%s7481_s4 + $0x120] ss:$8 sps:$4 sm:$0xff]  }
  0xa4   :  { %1531 = vmatpush1.bf16.msra.mxu1 %v5105_v45  ;;  %1495 = vmatprep.subr.bf16.mxu0 %v5116_v48  ;;  %v5183_v45 = vld [vmem:[%s7481_s4] ss:$8 sps:$4 sm:$0xff]   ;;  %v5230_v48 = vld [vmem:[%s7481_s4 + $0x114] ss:$8 sps:$4 sm:$0xff]  }
  0xa5   :  { %1532 = vmatprep.subr.bf16.mxu1 %v5113_v47  ;;  %v5188_v47 = vld [vmem:[%s7481_s4 + $0xf4] ss:$8 sps:$4 sm:$0xff]  }
  0xa7   :  { %1496 = vmatpush2.bf16.msra.mxu0 %v5114_v50  ;;  %v5228_v50 = vld [vmem:[%s7481_s4 + $0x110] ss:$8 sps:$4 sm:$0xff]  }
  0xa8   :  { %1533 = vmatpush1.bf16.msra.mxu1 %v5111_v49  ;;  %1497 = vmatprep.subr.bf16.mxu0 %v5122_v53  ;;  %v5186_v49 = vld [vmem:[%s7481_s4 + $0xf0] ss:$8 sps:$4 sm:$0xff]   ;;  %v5233_v53 = vld [vmem:[%s7481_s4 + $0x104] ss:$8 sps:$4 sm:$0xff]  }
  0xa9   :  { %1534 = vmatprep.subr.bf16.mxu1 %v5119_v52  ;;  %v5191_v52 = vld [vmem:[%s7481_s4 + $0xe4] ss:$8 sps:$4 sm:$0xff]  }
  0xab   :  { %1498 = vmatpush2.bf16.msra.mxu0 %v5120_v55  ;;  %v5231_v55 = vld [vmem:[%s7481_s4 + $0x100] ss:$8 sps:$4 sm:$0xff]  }
  0xac   :  { %1535 = vmatpush2.bf16.msra.mxu1 %v5117_v54  ;;  %1499 = vmatprep.subr.bf16.mxu0 %v5128_v57  ;;  %v5189_v54 = vld [vmem:[%s7481_s4 + $0xe0] ss:$8 sps:$4 sm:$0xff]   ;;  %v5236_v57 = vld [vmem:[%s7481_s4 + $0x1f4] ss:$8 sps:$4 sm:$0xff]  }
  0xad   :  { %1536 = vmatprep.subr.bf16.mxu1 %v5125_v56  ;;  %v5194_v56 = vld [vmem:[%s7481_s4 + $0xd4] ss:$8 sps:$4 sm:$0xff]  }
  0xaf   :  { %1500 = vmatpush2.bf16.msra.mxu0 %v5126_v59  ;;  %v5234_v59 = vld [vmem:[%s7481_s4 + $0x1f0] ss:$8 sps:$4 sm:$0xff]  }
  0xb0   :  { %1537 = vmatpush2.bf16.msra.mxu1 %v5123_v58  ;;  %1501 = vmatprep.subr.bf16.mxu0 %v5134_v61  ;;  %v5192_v58 = vld [vmem:[%s7481_s4 + $0xd0] ss:$8 sps:$4 sm:$0xff]   ;;  %v5239_v61 = vld [vmem:[%s7481_s4 + $0x1e4] ss:$8 sps:$4 sm:$0xff]  }
  0xb1   :  { %1538 = vmatprep.subr.bf16.mxu1 %v5131_v60  ;;  %v5197_v60 = vld [vmem:[%s7481_s4 + $0xc4] ss:$8 sps:$4 sm:$0xff]  }
  0xb3   :  { %1502 = vmatpush2.bf16.msra.mxu0 %v5132_v63  ;;  %v5237_v63 = vld [vmem:[%s7481_s4 + $0x1e0] ss:$8 sps:$4 sm:$0xff]  }
  0xb4   :  { %1539 = vmatpush2.bf16.msra.mxu1 %v5129_v62  ;;  %1503 = vmatprep.subr.bf16.mxu0 %v5140_v1  ;;  %v5195_v62 = vld [vmem:[%s7481_s4 + $0xc0] ss:$8 sps:$4 sm:$0xff]   ;;  %v5242_v1 = vld [vmem:[%s7481_s4 + $0x1d4] ss:$8 sps:$4 sm:$0xff]  }
  0xb5   :  { %1540 = vmatprep.subr.bf16.mxu1 %v5137_v0  ;;  %v5200_v0 = vld [vmem:[%s7481_s4 + $0xb4] ss:$8 sps:$4 sm:$0xff]  }
  0xb7   :  { %1504 = vmatpush2.bf16.msra.mxu0 %v5138_v3  ;;  %v5240_v3 = vld [vmem:[%s7481_s4 + $0x1d0] ss:$8 sps:$4 sm:$0xff]  }
  0xb8   :  { %1541 = vmatpush2.bf16.msra.mxu1 %v5135_v2  ;;  %1505 = vmatprep.subr.bf16.mxu0 %v5146_v5  ;;  %v5198_v2 = vld [vmem:[%s7481_s4 + $0xb0] ss:$8 sps:$4 sm:$0xff]   ;;  %v5245_v5 = vld [vmem:[%s7481_s4 + $0x1c4] ss:$8 sps:$4 sm:$0xff]  }
  0xb9   :  { %1542 = vmatprep.subr.bf16.mxu1 %v5143_v4  ;;  %v5203_v4 = vld [vmem:[%s7481_s4 + $0xa4] ss:$8 sps:$4 sm:$0xff]  }
  0xbb   :  { %1506 = vmatpush2.bf16.msra.mxu0 %v5144_v9  ;;  %v5243_v9 = vld [vmem:[%s7481_s4 + $0x1c0] ss:$8 sps:$4 sm:$0xff]  }
  0xbc   :  { %1543 = vmatpush2.bf16.msra.mxu1 %v5141_v8  ;;  %1507 = vmatprep.subr.bf16.mxu0 %v5152_v11  ;;  %v5201_v8 = vld [vmem:[%s7481_s4 + $0xa0] ss:$8 sps:$4 sm:$0xff]   ;;  %v5204_v11 = vld [vmem:[%s7481_s4 + $0x90] ss:$8 sps:$4 sm:$0xff]  }
  0xbd   :  { %1544 = vmatprep.subr.bf16.mxu1 %v5149_v10  ;;  %v5206_v10 = vld [vmem:[%s7481_s4 + $0x94] ss:$8 sps:$4 sm:$0xff]  }
  0xbf   :  { %1508 = vmatpush2.bf16.msra.mxu0 %v5150_v15  ;;  %v5207_v15 = vld [vmem:[%s7481_s4 + $0x80] ss:$8 sps:$4 sm:$0xff]  }
  0xc0   :  { %1545 = vmatpush2.bf16.msra.mxu1 %v5147_v12  ;;  %1573 = vmatprep.subr.bf16.mxu0 %v5158_v17  ;;  %v5209_v12 = vld [vmem:[%s7481_s4 + $0x84] ss:$8 sps:$4 sm:$0xff]  }
  0xc1   :  { %1546 = vmatprep.subr.bf16.mxu1 %v5155_v16 }
  0xc2   :  { %1510 = vmatmul.mubr.bf16.vlgmr.msra.gmra.mxu0 %v6002_v7  ;;  %v5165_v7 = vld [vmem:[%s7481_s4 + $0x60] ss:$8 sps:$4 sm:$0xff]  }
  0xc3   :  { %1574 = vmatpush1.bf16.msra.mxu0 %v5156_v19  ;;  %1591 = vmatprep.mubr.bf16.mxu0 %v5721_v13 }
  0xc4   :  { %1547 = vmatpush2.bf16.msra.mxu1 %v5153_v18  ;;  %2004 = vmatprep.subr.bf16.mxu0 %v5164_v21  ;;  %v5246_v21 = vld [vmem:[%s7481_s4 + $0x1b0] ss:$8 sps:$4 sm:$0xff]  }
  0xc5   :  { %1548 = vmatprep.subr.bf16.mxu1 %v5161_v20  ;;  %v5248_v20 = vld [vmem:[%s7481_s4 + $0x1b4] ss:$8 sps:$4 sm:$0xff]  }
  0xc8   :  { %1549 = vmatpush2.bf16.msra.mxu1 %v5159_v22 }
  0xc9   :  { %2045 = vmatprep.subr.bf16.mxu1 %v5212_v28  ;;  %v5252_v28 = vld [vmem:[%s7481_s4 + $0x190] ss:$8 sps:$4 sm:$0xff]  }
  0xca   :  { %4484 = vmatmul.mubr.msk.bf16.vlgmr.msra.gmra.mxu0 %vm1268_vm0, %v5656_v25  ;;  %v5251_v25 = vld [vmem:[%s7481_s4 + $0x1a4] ss:$8 sps:$4 sm:$0xff]  }
  0xcb   :  { %1551 = vmatmul.mubr.bf16.vlgmr.msra.gmra.mxu1 %v6210_v14  ;;  %2005 = vmatpush1.bf16.msra.mxu0 %v5162_v23  ;;  %v5173_v14 = vld [vmem:[%s7481_s4 + $0x44] ss:$8 sps:$4 sm:$0xff]  }
  0xcc   :  { %2006 = vmatprep.subr.bf16.mxu0 %v5167_v24  ;;  %2046 = vmatpush1.bf16.msra.mxu1 %v5210_v51  ;;  %v5254_v51 = vld [vmem:[%s7481_s4 + $0x194] ss:$8 sps:$4 sm:$0xff]  }
  0xcd   :  { %2047 = vmatprep.subr.bf16.mxu1 %v5215_v29 }
  0xcf   :  { %2007 = vmatpush1.bf16.msra.mxu0 %v5165_v7 }
  0xd0   :  { %2008 = vmatprep.subr.bf16.mxu0 %v5170_v26  ;;  %2048 = vmatpush1.bf16.msra.mxu1 %v5213_v6  ;;  %v5249_v26 = vld [vmem:[%s7481_s4 + $0x1a0] ss:$8 sps:$4 sm:$0xff]  }
  0xd1   :  { %2049 = vmatprep.subr.bf16.mxu1 %v5218_v32 }
  0xd3   :  { %2009 = vmatpush1.bf16.msra.mxu0 %v5168_v27 }
  0xd4   :  { %2010 = vmatprep.subr.bf16.mxu0 %v5173_v14  ;;  %2050 = vmatpush1.bf16.msra.mxu1 %v5216_v35 }
  0xd5   :  { %2051 = vmatprep.subr.bf16.mxu1 %v5221_v36 }
  0xd7   :  { %2011 = vmatpush1.bf16.msra.mxu0 %v5171_v30 }
  0xd8   :  { %2012 = vmatprep.subr.bf16.mxu0 %v5176_v31  ;;  %2052 = vmatpush1.bf16.msra.mxu1 %v5219_v38 }
  0xd9   :  { %2053 = vmatprep.subr.bf16.mxu1 %v5224_v40 }
  0xdb   :  { %2013 = vmatpush1.bf16.msra.mxu0 %v5174_v33 }
  0xdc   :  { %2014 = vmatprep.subr.bf16.mxu0 %v5179_v34  ;;  %2054 = vmatpush1.bf16.msra.mxu1 %v5222_v42 }
  0xdd   :  { %2055 = vmatprep.subr.bf16.mxu1 %v5227_v44 }
  0xdf   :  { %2015 = vmatpush1.bf16.msra.mxu0 %v5177_v37 }
  0xe0   :  { %2016 = vmatprep.subr.bf16.mxu0 %v5182_v39  ;;  %2056 = vmatpush1.bf16.msra.mxu1 %v5225_v46 }
  0xe1   :  { %2057 = vmatprep.subr.bf16.mxu1 %v5230_v48 }
  0xe3   :  { %2017 = vmatpush1.bf16.msra.mxu0 %v5180_v41 }
  0xe4   :  { %2018 = vmatprep.subr.bf16.mxu0 %v5185_v43  ;;  %2058 = vmatpush1.bf16.msra.mxu1 %v5228_v50 }
  0xe5   :  { %2059 = vmatprep.subr.bf16.mxu1 %v5233_v53 }
  0xe7   :  { %2019 = vmatpush1.bf16.msra.mxu0 %v5183_v45 }
  0xe8   :  { %2020 = vmatprep.subr.bf16.mxu0 %v5188_v47  ;;  %2060 = vmatpush1.bf16.msra.mxu1 %v5231_v55 }
  0xe9   :  { %2061 = vmatprep.subr.bf16.mxu1 %v5236_v57 }
  0xeb   :  { %2021 = vmatpush2.bf16.msra.mxu0 %v5186_v49 }
  0xec   :  { %2022 = vmatprep.subr.bf16.mxu0 %v5191_v52  ;;  %2062 = vmatpush2.bf16.msra.mxu1 %v5234_v59 }
  0xed   :  { %2063 = vmatprep.subr.bf16.mxu1 %v5239_v61 }
  0xef   :  { %2023 = vmatpush2.bf16.msra.mxu0 %v5189_v54 }
  0xf0   :  { %2024 = vmatprep.subr.bf16.mxu0 %v5194_v56  ;;  %2064 = vmatpush2.bf16.msra.mxu1 %v5237_v63 }
  0xf1   :  { %2065 = vmatprep.subr.bf16.mxu1 %v5242_v1 }
  0xf3   :  { %2025 = vmatpush2.bf16.msra.mxu0 %v5192_v58 }
  0xf4   :  { %2026 = vmatprep.subr.bf16.mxu0 %v5197_v60  ;;  %2066 = vmatpush2.bf16.msra.mxu1 %v5240_v3 }
  0xf5   :  { %2067 = vmatprep.subr.bf16.mxu1 %v5245_v5 }
  0xf7   :  { %2027 = vmatpush2.bf16.msra.mxu0 %v5195_v62 }
  0xf8   :  { %2028 = vmatprep.subr.bf16.mxu0 %v5200_v0  ;;  %2068 = vmatpush2.bf16.msra.mxu1 %v5243_v9 }
  0xf9   :  { %2069 = vmatprep.subr.bf16.mxu1 %v5248_v20 }
  0xfb   :  { %2029 = vmatpush2.bf16.msra.mxu0 %v5198_v2 }
  0xfc   :  { %2030 = vmatprep.subr.bf16.mxu0 %v5203_v4  ;;  %2070 = vmatpush2.bf16.msra.mxu1 %v5246_v21 }
  0xfd   :  { %2071 = vmatprep.subr.bf16.mxu1 %v5251_v25 }
  0xff   :  { %2031 = vmatpush2.bf16.msra.mxu0 %v5201_v8 }
 0x100   :  { %2032 = vmatprep.subr.bf16.mxu0 %v5206_v10  ;;  %2072 = vmatpush2.bf16.msra.mxu1 %v5249_v26 }
 0x102   :  { %v1306_v16 = vpop.f32.mrf.mxu0 }
 0x103   :  { %v1347_v17 = vpop.f32.mrf.mxu1  ;;  %2033 = vmatpush2.bf16.msra.mxu0 %v5204_v11 }
 0x104   :  { %v1308_v18 = vpop.f32.mrf.mxu0  ;;  %2034 = vmatprep.subr.bf16.mxu0 %v5209_v12 }
 0x105   :  { %v1349_v19 = vpop.f32.mrf.mxu1 }
 0x106   :  { %v1310_v22 = vpop.f32.mrf.mxu0 }
 0x107   :  { %v1351_v23 = vpop.f32.mrf.mxu1  ;;  %2035 = vmatpush2.bf16.msra.mxu0 %v5207_v15 }
 0x108   :  { %v1311_v24 = vpop.f32.mrf.mxu0 }
 0x109   :  { %v1352_v7 = vpop.f32.mrf.mxu1 }
 0x10b   :  { %v1429_v27 = vpop.f32.mrf.mxu1 }
 0x10d   :  { %v1431_v14 = vpop.f32.mrf.mxu1 }
 0x10e   :  { %19 = vsyncpa [#allocation5], 0  ;;  %2073 = vmatprep.subr.bf16.mxu1 %v5254_v51  ;;  %v5257_v6 = vld [vmem:[%s7481_s4 + $0x184] ss:$8 sps:$4 sm:$0xff]   ;;  %v5255_v31 = vld [vmem:[%s7481_s4 + $0x180] ss:$8 sps:$4 sm:$0xff]   ;;  %v244_v32 = vlaneseq }
 0x10f   :  { %v1433_v29 = vpop.f32.mrf.mxu1  ;;  %2074 = vmatpush2.bf16.msra.mxu1 %v5252_v28  ;;  %v242_v35 = vld [vmem:[%s7480_s3] sm:$0xf]  ;;  %v5261_v51 = vld [vmem:[%s7483_s6 + $0xe8] ss:$16 sps:$4 sm:$0xff]   ;;  %v5263_v28 = vld [vmem:[%s7483_s6 + $0xec] ss:$16 sps:$4 sm:$0xff]  }
 0x110   :  { %2075 = vmatprep.subr.bf16.mxu1 %v5257_v6  ;;  %v6619_v33 = vshrl.u32 %v244_v32, 7  ;;  %v5266_v29 = vld [vmem:[%s7483_s6 + $0xc4] ss:$16 sps:$4 sm:$0xff]   ;;  %v5264_v6 = vld [vmem:[%s7483_s6 + $0xc0] ss:$16 sps:$4 sm:$0xff]   ;;  %vm4236_vm1 = vcmask 162816  }
 0x111   :  { %v1434_v30 = vpop.f32.mrf.mxu1  ;;  %v5275_v32 = vld [vmem:[%s7483_s6 + $0xac] ss:$16 sps:$4 sm:$0xff]  }
 0x112   :  { %v6622_v34 = vsub.s32 0, %v6619_v33  ;;  %v6628_v36 = vsub.s32 1, %v6619_v33  ;;  %v6634_v60 = vsub.s32 2, %v6619_v33  ;;  %v6637_v61 = vsub.s32 3, %v6619_v33  ;;  %v5269_v30 = vld [vmem:[%s7483_s6 + $0xcc] ss:$16 sps:$4 sm:$0xff]  }
 0x113   :  { %2076 = vmatpush2.bf16.msra.mxu1 %v5255_v31  ;;  %v5267_v31 = vld [vmem:[%s7483_s6 + $0xc8] ss:$16 sps:$4 sm:$0xff]  }
 0x114   :  { %v247_v37 = vrot.slane %v242_v35, %v6622_v34  ;;  %v251_v38 = vrot.slane %v242_v35, %v6628_v36  ;;  %v255_v63 = vrot.slane %v242_v35, %v6634_v60  ;;  %v259_v1 = vrot.slane %v242_v35, %v6637_v61  ;;  %2347 = vmatprep.subr.bf16.mxu1 %v5263_v28  ;;  %v5270_v35 = vld [vmem:[%s7483_s6 + $0xa0] ss:$16 sps:$4 sm:$0xff]   ;;  %v5320_v28 = vld [vmem:[%s7485_s8 + $0x11c] ss:$28 sps:$4 sm:$0xff]  }
 0x116   :  { %v1307_v39 = vadd.f32 %v1306_v16, %v247_v37  ;;  %v1309_v40 = vadd.f32 %v1308_v18, %v251_v38  ;;  %v5273_v37 = vld [vmem:[%s7483_s6 + $0xa8] ss:$16 sps:$4 sm:$0xff]   ;;  %v5278_v38 = vld [vmem:[%s7483_s6 + $0x84] ss:$16 sps:$4 sm:$0xff]  }
 0x118   :  { %v1348_v41 = vadd.f32 %v1347_v17, %v1307_v39  ;;  %v1350_v43 = vadd.f32 %v1349_v19, %v1309_v40  ;;  %v5281_v39 = vld [vmem:[%s7483_s6 + $0x8c] ss:$16 sps:$4 sm:$0xff]   ;;  %v5276_v40 = vld [vmem:[%s7483_s6 + $0x80] ss:$16 sps:$4 sm:$0xff]  }
 0x142   :  { %v1388_v42 = vpop.f32.mrf.mxu0 }
 0x143   :  { %v1389_v44 = vadd.f32 %v1388_v42, %v1348_v41  ;;  %v5279_v41 = vld [vmem:[%s7483_s6 + $0x88] ss:$16 sps:$4 sm:$0xff]   ;;  %v5284_v42 = vld [vmem:[%s7483_s6 + $0x64] ss:$16 sps:$4 sm:$0xff]  }
 0x144   :  { %v1390_v45 = vpop.f32.mrf.mxu0 }
 0x145   :  { %v1430_v46 = vadd.f32 %v1429_v27, %v1389_v44  ;;  %v1391_v47 = vadd.f32 %v1390_v45, %v1350_v43  ;;  %v5258_v27 = vld [vmem:[%s7483_s6 + $0xe0] ss:$16 sps:$4 sm:$0xff]   ;;  %v5285_v44 = vld [vmem:[%s7483_s6 + $0x68] ss:$16 sps:$4 sm:$0xff]   ;;  %v5287_v45 = vld [vmem:[%s7483_s6 + $0x6c] ss:$16 sps:$4 sm:$0xff]  }
 0x146   :  { %v1392_v48 = vpop.f32.mrf.mxu0  ;;  %v5282_v43 = vld [vmem:[%s7483_s6 + $0x60] ss:$16 sps:$4 sm:$0xff]  }
 0x147   :  { %v1432_v49 = vadd.f32 %v1431_v14, %v1391_v47  ;;  %v1600_v50 = vmax.f32 %v1430_v46, 0.0  ;;  %v5260_v14 = vld [vmem:[%s7483_s6 + $0xe4] ss:$16 sps:$4 sm:$0xff]   ;;  %v5293_v47 = vld [vmem:[%s7483_s6 + $0x4c] ss:$16 sps:$4 sm:$0xff]  }
 0x148   :  { %v1393_v52 = vpop.f32.mrf.mxu0  ;;  %2306 = vmatprep.subr.bf16.mxu0 %v5260_v14  ;;  %v5290_v46 = vld [vmem:[%s7483_s6 + $0x44] ss:$16 sps:$4 sm:$0xff]   ;;  %v5288_v48 = vld [vmem:[%s7483_s6 + $0x40] ss:$16 sps:$4 sm:$0xff]  }
 0x149   :  { %v1601_v53 = vmax.f32 %v1432_v49, 0.0  ;;  %v1604_v56 = vpack.c.bf16 %v1600_v50, %v1600_v50  ;;  %v5291_v49 = vld [vmem:[%s7483_s6 + $0x48] ss:$16 sps:$4 sm:$0xff]   ;;  %v5296_v50 = vld [vmem:[%s7483_s6 + $0x24] ss:$16 sps:$4 sm:$0xff]  }
 0x14a   :  { %v5299_v52 = vld [vmem:[%s7483_s6 + $0x2c] ss:$16 sps:$4 sm:$0xff]  }
 0x14b   :  { %v1470_v54 = vpop.f32.mrf.mxu1  ;;  %v1605_v55 = vpack.c.bf16 %v1601_v53, %v1601_v53  ;;  %v5294_v53 = vld [vmem:[%s7483_s6 + $0x20] ss:$16 sps:$4 sm:$0xff]  }
 0x14c   :  { %v1471_v3 = vadd.f32 %v1470_v54, %v255_v63  ;;  %v5297_v54 = vld [vmem:[%s7483_s6 + $0x28] ss:$16 sps:$4 sm:$0xff]   ;;  %v5312_v14 = vld [vmem:[%s7485_s8 + $0x150] ss:$28 sps:$4 sm:$0xff]  }
 0x14d   :  { %v1472_v57 = vpop.f32.mrf.mxu1  ;;  %2036 = vmatprep.mubr.bf16.mxu0 %v1605_v55  ;;  %v5302_v55 = vld [vmem:[%s7483_s6 + $0x4] ss:$16 sps:$4 sm:$0xff]  }
 0x14e   :  { %2037 = vmatmul.mubr.bf16.vlgmr.msra.gmra.mxu0 %v1604_v56  ;;  %v1473_v5 = vadd.f32 %v1472_v57, %v259_v1  ;;  %v5305_v56 = vld [vmem:[%s7483_s6 + $0xc] ss:$16 sps:$4 sm:$0xff]   ;;  %v5300_v57 = vld [vmem:[%s7483_s6] ss:$16 sps:$4 sm:$0xff]  }
 0x14f   :  { %v1474_v58 = vpop.f32.mrf.mxu1  ;;  %2338 = vmatprep.mubr.bf16.mxu0 %v5721_v13  ;;  %2307 = vmatpush1.bf16.msra.mxu0 %v5258_v27  ;;  %v5317_v27 = vld [vmem:[%s7485_s8 + $0x4d4] ss:$28 sps:$4 sm:$0xff]  }
 0x150   :  { %2308 = vmatprep.subr.bf16.mxu0 %v5266_v29  ;;  %v5303_v58 = vld [vmem:[%s7483_s6 + $0x8] ss:$16 sps:$4 sm:$0xff]  }
 0x151   :  { %v1475_v59 = vpop.f32.mrf.mxu1  ;;  %v5323_v29 = vld [vmem:[%s7485_s8 + $0x49c] ss:$28 sps:$4 sm:$0xff]  }
 0x152   :  { %v5308_v59 = vld [vmem:[%s7485_s8 + $0x18c] ss:$28 sps:$4 sm:$0xff]  }
 0x153   :  { %2309 = vmatpush1.bf16.msra.mxu0 %v5264_v6  ;;  %v5321_v6 = vld [vmem:[%s7485_s8 + $0x498] ss:$28 sps:$4 sm:$0xff]  }
 0x182   :  { %v1511_v62 = vpop.f32.mrf.mxu0 }
 0x183   :  { %v1512_v8 = vadd.f32 %v1511_v62, %v1471_v3  ;;  %v5311_v62 = vld [vmem:[%s7485_s8 + $0x50c] ss:$28 sps:$4 sm:$0xff]   ;;  %v1672_v3 = vld [vmem:[%s7482_s5] sm:$0x3] }
 0x184   :  { %v1513_v0 = vpop.f32.mrf.mxu0 }
 0x185   :  { %v1514_v11 = vadd.f32 %v1513_v0, %v1473_v5  ;;  %v1681_v5 = vrot.slane %v1672_v3, %v6628_v36 }
 0x186   :  { %v1515_v2 = vpop.f32.mrf.mxu0 }
 0x188   :  { %v1516_v4 = vpop.f32.mrf.mxu0 }
 0x189   :  { %v1677_v4 = vrot.slane %v1672_v3, %v6622_v34  ;;  %v5369_v3 = vld [vmem:[%s7485_s8 + $0x658] ss:$28 sps:$4 sm:$0xff]  }
 0x18a   :  { %v1593_v10 = vpop.f32.mrf.mxu0 }
 0x18b   :  { %v1552_v9 = vpop.f32.mrf.mxu1 }
 0x18c   :  { %v1553_v12 = vadd.f32 %v1552_v9, %v1512_v8  ;;  %v1595_v16 = vpop.f32.mrf.mxu0 }
 0x18d   :  { %v1554_v15 = vpop.f32.mrf.mxu1 }
 0x18e   :  { %v1594_v17 = vadd.f32 %v1593_v10, %v1553_v12  ;;  %v1555_v18 = vadd.f32 %v1554_v15, %v1514_v11  ;;  %v1597_v20 = vpop.f32.mrf.mxu0 }
 0x18f   :  { %v1556_v19 = vpop.f32.mrf.mxu1  ;;  %v45_v20 = vld [vmem:[%s7478_s1] sm:$0xff] }
 0x190   :  { %v1596_v21 = vadd.f32 %v1595_v16, %v1555_v18  ;;  %v1602_v22 = vmax.f32 %v1594_v17, 0.0  ;;  %v1598_v24 = vpop.f32.mrf.mxu0 }
 0x191   :  { %v1557_v23 = vpop.f32.mrf.mxu1  ;;  %v5306_v24 = vld [vmem:[%s7485_s8 + $0x188] ss:$28 sps:$4 sm:$0xff]  }
 0x192   :  { %v1603_v7 = vmax.f32 %v1596_v21, 0.0  ;;  %v1606_v26 = vpack.c.bf16 %v1602_v22, %v1602_v22 }
 0x194   :  { %v1607_v25 = vpack.c.bf16 %v1603_v7, %v1603_v7  ;;  %v5309_v7 = vld [vmem:[%s7485_s8 + $0x508] ss:$28 sps:$4 sm:$0xff]  }
 0x196   :  { %2077 = vmatprep.mubr.bf16.mxu1 %v1607_v25 }
 0x197   :  { %2078 = vmatmul.mubr.bf16.vlgmr.msra.gmra.mxu1 %v1606_v26  ;;  %v5314_v26 = vld [vmem:[%s7485_s8 + $0x154] ss:$28 sps:$4 sm:$0xff]  }
 0x198   :  { %2348 = vmatpush1.bf16.msra.mxu1 %v5261_v51  ;;  %2379 = vmatprep.mubr.bf16.mxu1 %v5721_v13  ;;  %v5272_v13 = vld [vmem:[%s7483_s6 + $0xa4] ss:$16 sps:$4 sm:$0xff]   ;;  %v5315_v51 = vld [vmem:[%s7485_s8 + $0x4d0] ss:$28 sps:$4 sm:$0xff]  }
 0x199   :  { %2349 = vmatprep.subr.bf16.mxu1 %v5269_v30  ;;  %2310 = vmatprep.subr.bf16.mxu0 %v5272_v13  ;;  %v5318_v30 = vld [vmem:[%s7485_s8 + $0x118] ss:$28 sps:$4 sm:$0xff]   ;;  %v5329_v13 = vld [vmem:[%s7485_s8 + $0x464] ss:$28 sps:$4 sm:$0xff]  }
 0x19a   :  { %2311 = vmatpush1.bf16.msra.mxu0 %v5270_v35  ;;  %v5327_v35 = vld [vmem:[%s7485_s8 + $0x460] ss:$28 sps:$4 sm:$0xff]  }
 0x19b   :  { %2312 = vmatprep.subr.bf16.mxu0 %v5278_v38  ;;  %v5335_v38 = vld [vmem:[%s7485_s8 + $0x42c] ss:$28 sps:$4 sm:$0xff]  }
 0x19c   :  { %2350 = vmatpush1.bf16.msra.mxu1 %v5267_v31  ;;  %v5326_v31 = vld [vmem:[%s7485_s8 + $0xe4] ss:$28 sps:$4 sm:$0xff]  }
 0x19d   :  { %2351 = vmatprep.subr.bf16.mxu1 %v5275_v32  ;;  %v5324_v32 = vld [vmem:[%s7485_s8 + $0xe0] ss:$28 sps:$4 sm:$0xff]  }
 0x19e   :  { %2313 = vmatpush1.bf16.msra.mxu0 %v5276_v40  ;;  %v5333_v40 = vld [vmem:[%s7485_s8 + $0x428] ss:$28 sps:$4 sm:$0xff]  }
 0x19f   :  { %2314 = vmatprep.subr.bf16.mxu0 %v5284_v42  ;;  %v5341_v42 = vld [vmem:[%s7485_s8 + $0x3f4] ss:$28 sps:$4 sm:$0xff]  }
 0x1a0   :  { %2352 = vmatpush1.bf16.msra.mxu1 %v5273_v37  ;;  %v5332_v37 = vld [vmem:[%s7485_s8 + $0xac] ss:$28 sps:$4 sm:$0xff]  }
 0x1a1   :  { %2353 = vmatprep.subr.bf16.mxu1 %v5281_v39  ;;  %v5330_v39 = vld [vmem:[%s7485_s8 + $0xa8] ss:$28 sps:$4 sm:$0xff]  }
 0x1a2   :  { %2315 = vmatpush1.bf16.msra.mxu0 %v5282_v43  ;;  %v5336_v43 = vld [vmem:[%s7485_s8 + $0x70] ss:$28 sps:$4 sm:$0xff]  }
 0x1a3   :  { %2316 = vmatprep.subr.bf16.mxu0 %v5290_v46  ;;  %v5347_v46 = vld [vmem:[%s7485_s8 + $0x3bc] ss:$28 sps:$4 sm:$0xff]  }
 0x1a4   :  { %2354 = vmatpush1.bf16.msra.mxu1 %v5279_v41  ;;  %v5338_v41 = vld [vmem:[%s7485_s8 + $0x74] ss:$28 sps:$4 sm:$0xff]  }
 0x1a5   :  { %2355 = vmatprep.subr.bf16.mxu1 %v5287_v45  ;;  %v5344_v45 = vld [vmem:[%s7485_s8 + $0x3c] ss:$28 sps:$4 sm:$0xff]  }
 0x1a6   :  { %2317 = vmatpush1.bf16.msra.mxu0 %v5288_v48  ;;  %v5345_v48 = vld [vmem:[%s7485_s8 + $0x3b8] ss:$28 sps:$4 sm:$0xff]  }
 0x1a7   :  { %2318 = vmatprep.subr.bf16.mxu0 %v5296_v50  ;;  %v5353_v50 = vld [vmem:[%s7485_s8 + $0x384] ss:$28 sps:$4 sm:$0xff]  }
 0x1a8   :  { %2356 = vmatpush1.bf16.msra.mxu1 %v5285_v44  ;;  %v5339_v44 = vld [vmem:[%s7485_s8 + $0x3f0] ss:$28 sps:$4 sm:$0xff]  }
 0x1a9   :  { %2357 = vmatprep.subr.bf16.mxu1 %v5293_v47  ;;  %v5342_v47 = vld [vmem:[%s7485_s8 + $0x38] ss:$28 sps:$4 sm:$0xff]  }
 0x1aa   :  { %2319 = vmatpush1.bf16.msra.mxu0 %v5294_v53  ;;  %v5351_v53 = vld [vmem:[%s7485_s8 + $0x380] ss:$28 sps:$4 sm:$0xff]  }
 0x1ab   :  { %2320 = vmatprep.subr.bf16.mxu0 %v5302_v55  ;;  %v5359_v55 = vld [vmem:[%s7485_s8 + $0x6cc] ss:$28 sps:$4 sm:$0xff]  }
 0x1ac   :  { %2358 = vmatpush1.bf16.msra.mxu1 %v5291_v49  ;;  %v5350_v49 = vld [vmem:[%s7485_s8 + $0x4] ss:$28 sps:$4 sm:$0xff]  }
 0x1ad   :  { %2359 = vmatprep.subr.bf16.mxu1 %v5299_v52  ;;  %v5348_v52 = vld [vmem:[%s7485_s8] ss:$28 sps:$4 sm:$0xff]  }
 0x1ae   :  { %2321 = vmatpush1.bf16.msra.mxu0 %v5300_v57  ;;  %v5357_v57 = vld [vmem:[%s7485_s8 + $0x6c8] ss:$28 sps:$4 sm:$0xff]  }
 0x1af   :  { %3841 = vmatprep.subr.bf16.mxu0 %v5308_v59  ;;  %v5365_v59 = vld [vmem:[%s7485_s8 + $0x694] ss:$28 sps:$4 sm:$0xff]  }
 0x1b0   :  { %2360 = vmatpush1.bf16.msra.mxu1 %v5297_v54  ;;  %v5356_v54 = vld [vmem:[%s7485_s8 + $0x34c] ss:$28 sps:$4 sm:$0xff]  }
 0x1b1   :  { %2361 = vmatprep.subr.bf16.mxu1 %v5305_v56  ;;  %v5354_v56 = vld [vmem:[%s7485_s8 + $0x348] ss:$28 sps:$4 sm:$0xff]  }
 0x1b4   :  { %2362 = vmatpush1.bf16.msra.mxu1 %v5303_v58  ;;  %v5362_v58 = vld [vmem:[%s7485_s8 + $0x314] ss:$28 sps:$4 sm:$0xff]  }
 0x1b5   :  { %3882 = vmatprep.subr.bf16.mxu1 %v5311_v62  ;;  %v5360_v62 = vld [vmem:[%s7485_s8 + $0x310] ss:$28 sps:$4 sm:$0xff]  }
 0x20e   :  { %v2038_v63 = vpop.f32.mrf.mxu0 }
 0x20f   :  { %v2039_v8 = vadd.f32 %v2038_v63, %v1677_v4  ;;  %v5363_v63 = vld [vmem:[%s7485_s8 + $0x690] ss:$28 sps:$4 sm:$0xff]   ;;  %v5374_v4 = vld [vmem:[%s7485_s8 + $0x2a4] ss:$28 sps:$4 sm:$0xff]  }
 0x210   :  { %v2040_v0 = vpop.f32.mrf.mxu0 }
 0x211   :  { %v2041_v10 = vadd.f32 %v2040_v0, %v1681_v5  ;;  %v5368_v0 = vld [vmem:[%s7485_s8 + $0x2dc] ss:$28 sps:$4 sm:$0xff]   ;;  %v5377_v5 = vld [vmem:[%s7485_s8 + $0x624] ss:$28 sps:$4 sm:$0xff]  }
 0x212   :  { %v2042_v1 = vpop.f32.mrf.mxu0 }
 0x213   :  { %v5371_v1 = vld [vmem:[%s7485_s8 + $0x65c] ss:$28 sps:$4 sm:$0xff]  }
 0x214   :  { %v2043_v2 = vpop.f32.mrf.mxu0 }
 0x215   :  { %v5366_v2 = vld [vmem:[%s7485_s8 + $0x2d8] ss:$28 sps:$4 sm:$0xff]  }
 0x257   :  { %v2079_v9 = vpop.f32.mrf.mxu1 }
 0x258   :  { %v2080_v11 = vadd.f32 %v2079_v9, %v2039_v8  ;;  %v5372_v8 = vld [vmem:[%s7485_s8 + $0x2a0] ss:$28 sps:$4 sm:$0xff]  }
 0x259   :  { %v2081_v12 = vpop.f32.mrf.mxu1  ;;  %v5375_v9 = vld [vmem:[%s7485_s8 + $0x620] ss:$28 sps:$4 sm:$0xff]  }
 0x25a   :  { %v2082_v15 = vadd.f32 %v2081_v12, %v2041_v10  ;;  %4237 = vst.msk [vmem:[#allocation4] sm:$0xff] %vm4236_vm1, %v2080_v11  ;;  %v5380_v10 = vld [vmem:[%s7485_s8 + $0x26c] ss:$28 sps:$4 sm:$0xff]  }
 0x25b   :  { %v2083_v16 = vpop.f32.mrf.mxu1  ;;  %v5378_v12 = vld [vmem:[%s7485_s8 + $0x268] ss:$28 sps:$4 sm:$0xff]  }
 0x25c   :  { %v2086_v17 = vmul.f32 0.5, %v2082_v15  ;;  %4238 = vst.msk [vmem:[#allocation6] sm:$0xff] %vm4236_vm1, %v2082_v15  ;;  %v5381_v15 = vld [vmem:[%s7485_s8 + $0x5e8] ss:$28 sps:$4 sm:$0xff]   ;;  %v5386_v16 = vld [vmem:[%s7485_s8 + $0x234] ss:$28 sps:$4 sm:$0xff]  }
 0x25d   :  { %v2084_v18 = vpop.f32.mrf.mxu1 }
 0x25e   :  { %v2087_v19 = vmul.f32 1.442695, %v2086_v17  ;;  %v5389_v17 = vld [vmem:[%s7485_s8 + $0x5b4] ss:$28 sps:$4 sm:$0xff]  }
 0x25f   :  { %v5384_v18 = vld [vmem:[%s7485_s8 + $0x230] ss:$28 sps:$4 sm:$0xff]  }
 0x260   :  { %5626 = vpow2.f32 %v2087_v19  ;;  %v5387_v19 = vld [vmem:[%s7485_s8 + $0x5b0] ss:$28 sps:$4 sm:$0xff]  }
 0x26d   :  { %v5627_v21 = vpop.eup %5626 }
 0x26e   :  { %v2089_v22 = vmul.f32 %v5627_v21, %v45_v20  ;;  %v5392_v20 = vld [vmem:[%s7485_s8 + $0x1fc] ss:$28 sps:$4 sm:$0xff]  }
 0x26f   :  { %v5395_v21 = vld [vmem:[%s7485_s8 + $0x57c] ss:$28 sps:$4 sm:$0xff]  }
 0x270   :  { %v2090_v23 = vadd.f32 %v2089_v22, %v2080_v11  ;;  %v5383_v11 = vld [vmem:[%s7485_s8 + $0x5ec] ss:$28 sps:$4 sm:$0xff]   ;;  %v5390_v22 = vld [vmem:[%s7485_s8 + $0x1f8] ss:$28 sps:$4 sm:$0xff]  }
 0x272   :  { %v2091_v25 = vpack.c.bf16 %v2090_v23, %v2090_v23  ;;  %v5393_v23 = vld [vmem:[%s7485_s8 + $0x578] ss:$28 sps:$4 sm:$0xff]  }
 0x274   :  { %2339 = vmatmul.mubr.bf16.vlgmr.msra.gmra.mxu0 %v2091_v25  ;;  %2380 = vmatmul.mubr.bf16.vlgmr.msra.gmra.mxu1 %v2091_v25  ;;  %v5396_v25 = vld [vmem:[%s7485_s8 + $0x1c0] ss:$28 sps:$4 sm:$0xff]  }
 0x275   :  { %3842 = vmatpush1.bf16.msra.mxu0 %v5306_v24  ;;  %3883 = vmatpush1.bf16.msra.mxu1 %v5309_v7  ;;  %v5398_v24 = vld [vmem:[%s7485_s8 + $0x1c4] ss:$28 sps:$4 sm:$0xff]  }
 0x276   :  { %3843 = vmatprep.subr.bf16.mxu0 %v5314_v26  ;;  %3884 = vmatprep.subr.bf16.mxu1 %v5317_v27  ;;  %v5401_v7 = vld [vmem:[%s7485_s8 + $0x544] ss:$28 sps:$4 sm:$0xff]   ;;  %v5404_v27 = vld [vmem:[%s7485_s8 + $0x194] ss:$28 sps:$4 sm:$0xff]  }
 0x277   :  { %v5399_v26 = vld [vmem:[%s7485_s8 + $0x540] ss:$28 sps:$4 sm:$0xff]  }
 0x279   :  { %3844 = vmatpush1.bf16.msra.mxu0 %v5312_v14  ;;  %3885 = vmatpush1.bf16.msra.mxu1 %v5315_v51  ;;  %v5407_v14 = vld [vmem:[%s7485_s8 + $0x514] ss:$28 sps:$4 sm:$0xff]   ;;  %v2124_v51 = vld [vmem:[%s7484_s7] sm:$0xf] }
 0x27a   :  { %3845 = vmatprep.subr.bf16.mxu0 %v5320_v28  ;;  %3886 = vmatprep.subr.bf16.mxu1 %v5323_v29  ;;  %v2129_v28 = vrot.slane %v2124_v51, %v6622_v34  ;;  %v2137_v29 = vrot.slane %v2124_v51, %v6634_v60 }
 0x27d   :  { %3846 = vmatpush1.bf16.msra.mxu0 %v5318_v30  ;;  %3887 = vmatpush1.bf16.msra.mxu1 %v5321_v6  ;;  %v2133_v30 = vrot.slane %v2124_v51, %v6628_v36  ;;  %v2141_v6 = vrot.slane %v2124_v51, %v6637_v61  ;;  %v5458_v51 = vld [vmem:[%s7485_s8 + $0x31c] ss:$28 sps:$4 sm:$0xff]  }
 0x27e   :  { %3847 = vmatprep.subr.bf16.mxu0 %v5326_v31  ;;  %3888 = vmatprep.subr.bf16.mxu1 %v5329_v13 }
 0x281   :  { %3848 = vmatpush1.bf16.msra.mxu0 %v5324_v32  ;;  %3889 = vmatpush1.bf16.msra.mxu1 %v5327_v35 }
 0x282   :  { %3849 = vmatprep.subr.bf16.mxu0 %v5332_v37  ;;  %3890 = vmatprep.subr.bf16.mxu1 %v5335_v38 }
 0x285   :  { %3850 = vmatpush1.bf16.msra.mxu0 %v5330_v39  ;;  %3891 = vmatpush1.bf16.msra.mxu1 %v5333_v40 }
 0x286   :  { %3851 = vmatprep.subr.bf16.mxu0 %v5338_v41  ;;  %3892 = vmatprep.subr.bf16.mxu1 %v5341_v42 }
 0x289   :  { %3852 = vmatpush1.bf16.msra.mxu0 %v5336_v43  ;;  %3893 = vmatpush1.bf16.msra.mxu1 %v5339_v44 }
 0x28a   :  { %3853 = vmatprep.subr.bf16.mxu0 %v5344_v45  ;;  %3894 = vmatprep.subr.bf16.mxu1 %v5347_v46 }
 0x28d   :  { %3854 = vmatpush1.bf16.msra.mxu0 %v5342_v47  ;;  %3895 = vmatpush1.bf16.msra.mxu1 %v5345_v48 }
 0x28e   :  { %3855 = vmatprep.subr.bf16.mxu0 %v5350_v49  ;;  %3896 = vmatprep.subr.bf16.mxu1 %v5353_v50 }
 0x291   :  { %3856 = vmatpush1.bf16.msra.mxu0 %v5348_v52  ;;  %3897 = vmatpush1.bf16.msra.mxu1 %v5351_v53  ;;  %v5402_v52 = vld [vmem:[%s7485_s8 + $0x190] ss:$28 sps:$4 sm:$0xff]  }
 0x292   :  { %3857 = vmatprep.subr.bf16.mxu0 %v5356_v54  ;;  %3898 = vmatprep.subr.bf16.mxu1 %v5359_v55  ;;  %v5405_v53 = vld [vmem:[%s7485_s8 + $0x510] ss:$28 sps:$4 sm:$0xff]  }
 0x295   :  { %3858 = vmatpush2.bf16.msra.mxu0 %v5354_v56  ;;  %3899 = vmatpush2.bf16.msra.mxu1 %v5357_v57  ;;  %v5410_v56 = vld [vmem:[%s7485_s8 + $0x15c] ss:$28 sps:$4 sm:$0xff]  }
 0x296   :  { %3859 = vmatprep.subr.bf16.mxu0 %v5362_v58  ;;  %3900 = vmatprep.subr.bf16.mxu1 %v5365_v59  ;;  %v5413_v57 = vld [vmem:[%s7485_s8 + $0x4dc] ss:$28 sps:$4 sm:$0xff]  }
 0x297   :  { %v5408_v58 = vld [vmem:[%s7485_s8 + $0x158] ss:$28 sps:$4 sm:$0xff]  }
 0x298   :  { %v5411_v59 = vld [vmem:[%s7485_s8 + $0x4d8] ss:$28 sps:$4 sm:$0xff]  }
 0x299   :  { %3860 = vmatpush2.bf16.msra.mxu0 %v5360_v62  ;;  %3901 = vmatpush2.bf16.msra.mxu1 %v5363_v63  ;;  %v5416_v62 = vld [vmem:[%s7485_s8 + $0x124] ss:$28 sps:$4 sm:$0xff]  }
 0x29a   :  { %3861 = vmatprep.subr.bf16.mxu0 %v5368_v0  ;;  %3902 = vmatprep.subr.bf16.mxu1 %v5371_v1  ;;  %v5419_v63 = vld [vmem:[%s7485_s8 + $0x4a4] ss:$28 sps:$4 sm:$0xff]  }
 0x29b   :  { %v5414_v0 = vld [vmem:[%s7485_s8 + $0x120] ss:$28 sps:$4 sm:$0xff]  }
 0x29c   :  { %v5417_v1 = vld [vmem:[%s7485_s8 + $0x4a0] ss:$28 sps:$4 sm:$0xff]  }
 0x29d   :  { %3862 = vmatpush2.bf16.msra.mxu0 %v5366_v2  ;;  %3903 = vmatpush2.bf16.msra.mxu1 %v5369_v3  ;;  %v5422_v2 = vld [vmem:[%s7485_s8 + $0xec] ss:$28 sps:$4 sm:$0xff]  }
 0x29e   :  { %3863 = vmatprep.subr.bf16.mxu0 %v5374_v4  ;;  %3904 = vmatprep.subr.bf16.mxu1 %v5377_v5  ;;  %v5425_v3 = vld [vmem:[%s7485_s8 + $0x46c] ss:$28 sps:$4 sm:$0xff]  }
 0x29f   :  { %v5420_v4 = vld [vmem:[%s7485_s8 + $0xe8] ss:$28 sps:$4 sm:$0xff]  }
 0x2a0   :  { %v5423_v5 = vld [vmem:[%s7485_s8 + $0x468] ss:$28 sps:$4 sm:$0xff]  }
 0x2a1   :  { %3864 = vmatpush2.bf16.msra.mxu0 %v5372_v8  ;;  %3905 = vmatpush2.bf16.msra.mxu1 %v5375_v9  ;;  %v5428_v8 = vld [vmem:[%s7485_s8 + $0xb4] ss:$28 sps:$4 sm:$0xff]  }
 0x2a2   :  { %3865 = vmatprep.subr.bf16.mxu0 %v5380_v10  ;;  %3906 = vmatprep.subr.bf16.mxu1 %v5383_v11  ;;  %v5431_v9 = vld [vmem:[%s7485_s8 + $0x434] ss:$28 sps:$4 sm:$0xff]  }
 0x2a3   :  { %v5426_v10 = vld [vmem:[%s7485_s8 + $0xb0] ss:$28 sps:$4 sm:$0xff]  }
 0x2a4   :  { %v5429_v11 = vld [vmem:[%s7485_s8 + $0x430] ss:$28 sps:$4 sm:$0xff]  }
 0x2a5   :  { %3866 = vmatpush2.bf16.msra.mxu0 %v5378_v12  ;;  %3907 = vmatpush2.bf16.msra.mxu1 %v5381_v15  ;;  %v5434_v12 = vld [vmem:[%s7485_s8 + $0x7c] ss:$28 sps:$4 sm:$0xff]  }
 0x2a6   :  { %3867 = vmatprep.subr.bf16.mxu0 %v5386_v16  ;;  %3908 = vmatprep.subr.bf16.mxu1 %v5389_v17  ;;  %v5437_v15 = vld [vmem:[%s7485_s8 + $0x3fc] ss:$28 sps:$4 sm:$0xff]  }
 0x2a7   :  { %v5432_v16 = vld [vmem:[%s7485_s8 + $0x78] ss:$28 sps:$4 sm:$0xff]  }
 0x2a8   :  { %v5435_v17 = vld [vmem:[%s7485_s8 + $0x3f8] ss:$28 sps:$4 sm:$0xff]  }
 0x2a9   :  { %3868 = vmatpush2.bf16.msra.mxu0 %v5384_v18  ;;  %3909 = vmatpush2.bf16.msra.mxu1 %v5387_v19  ;;  %v5440_v18 = vld [vmem:[%s7485_s8 + $0x44] ss:$28 sps:$4 sm:$0xff]  }
 0x2aa   :  { %3869 = vmatprep.subr.bf16.mxu0 %v5392_v20  ;;  %3910 = vmatprep.subr.bf16.mxu1 %v5395_v21  ;;  %v5443_v19 = vld [vmem:[%s7485_s8 + $0x3c4] ss:$28 sps:$4 sm:$0xff]  }
 0x2ab   :  { %v5438_v20 = vld [vmem:[%s7485_s8 + $0x40] ss:$28 sps:$4 sm:$0xff]  }
 0x2ac   :  { %v5441_v21 = vld [vmem:[%s7485_s8 + $0x3c0] ss:$28 sps:$4 sm:$0xff]  }
 0x2ad   :  { %3870 = vmatpush2.bf16.msra.mxu0 %v5390_v22  ;;  %3911 = vmatpush2.bf16.msra.mxu1 %v5393_v23  ;;  %v5446_v22 = vld [vmem:[%s7485_s8 + $0xc] ss:$28 sps:$4 sm:$0xff]  }
 0x2ae   :  { %3871 = vmatprep.subr.bf16.mxu0 %v5398_v24  ;;  %3912 = vmatprep.subr.bf16.mxu1 %v5401_v7  ;;  %v5449_v23 = vld [vmem:[%s7485_s8 + $0x38c] ss:$28 sps:$4 sm:$0xff]  }
 0x2af   :  { %v5444_v24 = vld [vmem:[%s7485_s8 + $0x8] ss:$28 sps:$4 sm:$0xff]  }
 0x2b0   :  { %v5447_v7 = vld [vmem:[%s7485_s8 + $0x388] ss:$28 sps:$4 sm:$0xff]  }
 0x2b1   :  { %3872 = vmatpush2.bf16.msra.mxu0 %v5396_v25  ;;  %3913 = vmatpush2.bf16.msra.mxu1 %v5399_v26  ;;  %v5452_v25 = vld [vmem:[%s7485_s8 + $0x354] ss:$28 sps:$4 sm:$0xff]  }
 0x2b2   :  { %3923 = vmatprep.subr.bf16.mxu0 %v5404_v27  ;;  %3964 = vmatprep.subr.bf16.mxu1 %v5407_v14  ;;  %v5455_v26 = vld [vmem:[%s7485_s8 + $0x6d4] ss:$28 sps:$4 sm:$0xff]  }
 0x2b3   :  { %v5450_v27 = vld [vmem:[%s7485_s8 + $0x350] ss:$28 sps:$4 sm:$0xff]  }
 0x2b4   :  { %v5453_v14 = vld [vmem:[%s7485_s8 + $0x6d0] ss:$28 sps:$4 sm:$0xff]  }
 0x334   :  { %v2340_v31 = vpop.f32.mrf.mxu0  ;;  %v2381_v13 = vpop.f32.mrf.mxu1 }
 0x335   :  { %v2341_v32 = vadd.f32 %v2340_v31, %v2129_v28  ;;  %v2382_v35 = vadd.f32 %v2381_v13, %v2137_v29  ;;  %v5461_v28 = vld [vmem:[%s7485_s8 + $0x69c] ss:$28 sps:$4 sm:$0xff]   ;;  %v5467_v31 = vld [vmem:[%s7485_s8 + $0x664] ss:$28 sps:$4 sm:$0xff]  }
 0x336   :  { %v2342_v37 = vpop.f32.mrf.mxu0  ;;  %v2383_v38 = vpop.f32.mrf.mxu1  ;;  %v5456_v29 = vld [vmem:[%s7485_s8 + $0x318] ss:$28 sps:$4 sm:$0xff]   ;;  %v5462_v13 = vld [vmem:[%s7485_s8 + $0x2e0] ss:$28 sps:$4 sm:$0xff]  }
 0x337   :  { %v2343_v39 = vadd.f32 %v2342_v37, %v2133_v30  ;;  %v2384_v40 = vadd.f32 %v2383_v38, %v2141_v6  ;;  %v2388_v41 = vmax.f32 %v2341_v32, 0.0  ;;  %v2390_v42 = vmax.f32 %v2382_v35, 0.0  ;;  %v5459_v30 = vld [vmem:[%s7485_s8 + $0x698] ss:$28 sps:$4 sm:$0xff]   ;;  %v5464_v6 = vld [vmem:[%s7485_s8 + $0x2e4] ss:$28 sps:$4 sm:$0xff]  }
 0x338   :  { %v2344_v43 = vpop.f32.mrf.mxu0  ;;  %v2385_v44 = vpop.f32.mrf.mxu1  ;;  %v5465_v32 = vld [vmem:[%s7485_s8 + $0x660] ss:$28 sps:$4 sm:$0xff]   ;;  %v5470_v35 = vld [vmem:[%s7485_s8 + $0x2ac] ss:$28 sps:$4 sm:$0xff]  }
 0x339   :  { %v2389_v45 = vmax.f32 %v2343_v39, 0.0  ;;  %v2391_v46 = vmax.f32 %v2384_v40, 0.0  ;;  %v6961_v54 = vpack.c.bf16 %v2388_v41, %v2388_v41  ;;  %v6963_v55 = vpack.c.bf16 %v2390_v42, %v2390_v42  ;;  %v5473_v37 = vld [vmem:[%s7485_s8 + $0x62c] ss:$28 sps:$4 sm:$0xff]   ;;  %v5476_v40 = vld [vmem:[%s7485_s8 + $0x274] ss:$28 sps:$4 sm:$0xff]  }
 0x33a   :  { %v2345_v47 = vpop.f32.mrf.mxu0  ;;  %v2386_v48 = vpop.f32.mrf.mxu1  ;;  %v5468_v38 = vld [vmem:[%s7485_s8 + $0x2a8] ss:$28 sps:$4 sm:$0xff]   ;;  %v5479_v41 = vld [vmem:[%s7485_s8 + $0x5f4] ss:$28 sps:$4 sm:$0xff]   ;;  %v5482_v44 = vld [vmem:[%s7485_s8 + $0x23c] ss:$28 sps:$4 sm:$0xff]  }
 0x33b   :  { %v6951_v49 = vpack.c.bf16 %v2389_v45, %v2389_v45  ;;  %v6953_v50 = vpack.c.bf16 %v2391_v46, %v2391_v46  ;;  %v5471_v39 = vld [vmem:[%s7485_s8 + $0x628] ss:$28 sps:$4 sm:$0xff]   ;;  %v5474_v42 = vld [vmem:[%s7485_s8 + $0x270] ss:$28 sps:$4 sm:$0xff]   ;;  %v5485_v45 = vld [vmem:[%s7485_s8 + $0x5bc] ss:$28 sps:$4 sm:$0xff]  }
 0x33c   :  { %v5477_v43 = vld [vmem:[%s7485_s8 + $0x5f0] ss:$28 sps:$4 sm:$0xff]   ;;  %v5480_v46 = vld [vmem:[%s7485_s8 + $0x238] ss:$28 sps:$4 sm:$0xff]   ;;  %v5488_v48 = vld [vmem:[%s7485_s8 + $0x204] ss:$28 sps:$4 sm:$0xff]  }
 0x33d   :  { %3873 = vmatprep.mubr.bf16.mxu0 %v6951_v49  ;;  %3914 = vmatprep.mubr.bf16.mxu1 %v6953_v50  ;;  %v5483_v47 = vld [vmem:[%s7485_s8 + $0x5b8] ss:$28 sps:$4 sm:$0xff]  }
 0x33e   :  { %3874 = vmatmul.mubr.bf16.vlgmr.msra.gmra.mxu0 %v6961_v54  ;;  %3915 = vmatmul.mubr.bf16.vlgmr.msra.gmra.mxu1 %v6963_v55 }
 0x33f   :  { %3924 = vmatpush1.bf16.msra.mxu0 %v5402_v52  ;;  %3965 = vmatpush1.bf16.msra.mxu1 %v5405_v53  ;;  %v5491_v52 = vld [vmem:[%s7485_s8 + $0x584] ss:$28 sps:$4 sm:$0xff]  }
 0x340   :  { %3955 = vmatprep.mubr.bf16.mxu0 %v6951_v49  ;;  %3996 = vmatprep.mubr.bf16.mxu1 %v6953_v50  ;;  %v5486_v53 = vld [vmem:[%s7485_s8 + $0x200] ss:$28 sps:$4 sm:$0xff]  }
 0x341   :  { %3925 = vmatprep.subr.bf16.mxu0 %v5410_v56  ;;  %3966 = vmatprep.subr.bf16.mxu1 %v5413_v57  ;;  %v5489_v56 = vld [vmem:[%s7485_s8 + $0x580] ss:$28 sps:$4 sm:$0xff]   ;;  %v5494_v57 = vld [vmem:[%s7485_s8 + $0x1cc] ss:$28 sps:$4 sm:$0xff]  }
 0x343   :  { %3926 = vmatpush1.bf16.msra.mxu0 %v5408_v58  ;;  %3967 = vmatpush1.bf16.msra.mxu1 %v5411_v59  ;;  %v5497_v58 = vld [vmem:[%s7485_s8 + $0x54c] ss:$28 sps:$4 sm:$0xff]  }
 0x344   :  { %3927 = vmatprep.subr.bf16.mxu0 %v5416_v62  ;;  %3968 = vmatprep.subr.bf16.mxu1 %v5419_v63  ;;  %v5492_v59 = vld [vmem:[%s7485_s8 + $0x1c8] ss:$28 sps:$4 sm:$0xff]   ;;  %v5500_v63 = vld [vmem:[%s7485_s8 + $0x19c] ss:$28 sps:$4 sm:$0xff]  }
 0x345   :  { %v5495_v62 = vld [vmem:[%s7485_s8 + $0x548] ss:$28 sps:$4 sm:$0xff]  }
 0x347   :  { %3928 = vmatpush1.bf16.msra.mxu0 %v5414_v0  ;;  %3969 = vmatpush1.bf16.msra.mxu1 %v5417_v1  ;;  %v5503_v0 = vld [vmem:[%s7485_s8 + $0x51c] ss:$28 sps:$4 sm:$0xff]  }
 0x348   :  { %3929 = vmatprep.subr.bf16.mxu0 %v5422_v2  ;;  %3970 = vmatprep.subr.bf16.mxu1 %v5425_v3  ;;  %v5498_v1 = vld [vmem:[%s7485_s8 + $0x198] ss:$28 sps:$4 sm:$0xff]   ;;  %v5506_v3 = vld [vmem:[%s7485_s8 + $0x164] ss:$28 sps:$4 sm:$0xff]  }
 0x349   :  { %v5501_v2 = vld [vmem:[%s7485_s8 + $0x518] ss:$28 sps:$4 sm:$0xff]  }
 0x34b   :  { %3930 = vmatpush1.bf16.msra.mxu0 %v5420_v4  ;;  %3971 = vmatpush1.bf16.msra.mxu1 %v5423_v5  ;;  %v5509_v4 = vld [vmem:[%s7485_s8 + $0x4e4] ss:$28 sps:$4 sm:$0xff]  }
 0x34c   :  { %3931 = vmatprep.subr.bf16.mxu0 %v5428_v8  ;;  %3972 = vmatprep.subr.bf16.mxu1 %v5431_v9  ;;  %v5504_v5 = vld [vmem:[%s7485_s8 + $0x160] ss:$28 sps:$4 sm:$0xff]   ;;  %v5512_v9 = vld [vmem:[%s7485_s8 + $0x12c] ss:$28 sps:$4 sm:$0xff]  }
 0x34d   :  { %v5507_v8 = vld [vmem:[%s7485_s8 + $0x4e0] ss:$28 sps:$4 sm:$0xff]  }
 0x34f   :  { %3932 = vmatpush1.bf16.msra.mxu0 %v5426_v10  ;;  %3973 = vmatpush1.bf16.msra.mxu1 %v5429_v11  ;;  %v5515_v10 = vld [vmem:[%s7485_s8 + $0x4ac] ss:$28 sps:$4 sm:$0xff]  }
 0x350   :  { %3933 = vmatprep.subr.bf16.mxu0 %v5434_v12  ;;  %3974 = vmatprep.subr.bf16.mxu1 %v5437_v15  ;;  %v5510_v11 = vld [vmem:[%s7485_s8 + $0x128] ss:$28 sps:$4 sm:$0xff]   ;;  %v5518_v15 = vld [vmem:[%s7485_s8 + $0xf4] ss:$28 sps:$4 sm:$0xff]  }
 0x351   :  { %v5513_v12 = vld [vmem:[%s7485_s8 + $0x4a8] ss:$28 sps:$4 sm:$0xff]  }
 0x353   :  { %3934 = vmatpush1.bf16.msra.mxu0 %v5432_v16  ;;  %3975 = vmatpush1.bf16.msra.mxu1 %v5435_v17  ;;  %v5521_v16 = vld [vmem:[%s7485_s8 + $0x474] ss:$28 sps:$4 sm:$0xff]  }
 0x354   :  { %3935 = vmatprep.subr.bf16.mxu0 %v5440_v18  ;;  %3976 = vmatprep.subr.bf16.mxu1 %v5443_v19  ;;  %v5516_v17 = vld [vmem:[%s7485_s8 + $0xf0] ss:$28 sps:$4 sm:$0xff]   ;;  %v5524_v19 = vld [vmem:[%s7485_s8 + $0xbc] ss:$28 sps:$4 sm:$0xff]  }
 0x355   :  { %v5519_v18 = vld [vmem:[%s7485_s8 + $0x470] ss:$28 sps:$4 sm:$0xff]  }
 0x357   :  { %3936 = vmatpush1.bf16.msra.mxu0 %v5438_v20  ;;  %3977 = vmatpush1.bf16.msra.mxu1 %v5441_v21  ;;  %v5527_v20 = vld [vmem:[%s7485_s8 + $0x43c] ss:$28 sps:$4 sm:$0xff]  }
 0x358   :  { %3937 = vmatprep.subr.bf16.mxu0 %v5446_v22  ;;  %3978 = vmatprep.subr.bf16.mxu1 %v5449_v23  ;;  %v5522_v21 = vld [vmem:[%s7485_s8 + $0xb8] ss:$28 sps:$4 sm:$0xff]   ;;  %v5530_v23 = vld [vmem:[%s7485_s8 + $0x84] ss:$28 sps:$4 sm:$0xff]  }
 0x359   :  { %v5525_v22 = vld [vmem:[%s7485_s8 + $0x438] ss:$28 sps:$4 sm:$0xff]  }
 0x35b   :  { %3938 = vmatpush1.bf16.msra.mxu0 %v5444_v24  ;;  %3979 = vmatpush1.bf16.msra.mxu1 %v5447_v7  ;;  %v5533_v24 = vld [vmem:[%s7485_s8 + $0x404] ss:$28 sps:$4 sm:$0xff]  }
 0x35c   :  { %3939 = vmatprep.subr.bf16.mxu0 %v5452_v25  ;;  %3980 = vmatprep.subr.bf16.mxu1 %v5455_v26  ;;  %v5528_v7 = vld [vmem:[%s7485_s8 + $0x80] ss:$28 sps:$4 sm:$0xff]   ;;  %v5536_v26 = vld [vmem:[%s7485_s8 + $0x4c] ss:$28 sps:$4 sm:$0xff]  }
 0x35d   :  { %v5531_v25 = vld [vmem:[%s7485_s8 + $0x400] ss:$28 sps:$4 sm:$0xff]  }
 0x35f   :  { %3940 = vmatpush2.bf16.msra.mxu0 %v5450_v27  ;;  %3981 = vmatpush2.bf16.msra.mxu1 %v5453_v14  ;;  %v5539_v27 = vld [vmem:[%s7485_s8 + $0x3cc] ss:$28 sps:$4 sm:$0xff]  }
 0x360   :  { %3941 = vmatprep.subr.bf16.mxu0 %v5458_v51  ;;  %3982 = vmatprep.subr.bf16.mxu1 %v5461_v28  ;;  %v5534_v14 = vld [vmem:[%s7485_s8 + $0x48] ss:$28 sps:$4 sm:$0xff]   ;;  %v5542_v28 = vld [vmem:[%s7485_s8 + $0x14] ss:$28 sps:$4 sm:$0xff]  }
 0x361   :  { %v5537_v51 = vld [vmem:[%s7485_s8 + $0x3c8] ss:$28 sps:$4 sm:$0xff]  }
 0x363   :  { %3942 = vmatpush2.bf16.msra.mxu0 %v5456_v29  ;;  %3983 = vmatpush2.bf16.msra.mxu1 %v5459_v30  ;;  %v5545_v29 = vld [vmem:[%s7485_s8 + $0x394] ss:$28 sps:$4 sm:$0xff]  }
 0x364   :  { %3943 = vmatprep.subr.bf16.mxu0 %v5464_v6  ;;  %3984 = vmatprep.subr.bf16.mxu1 %v5467_v31  ;;  %v5540_v30 = vld [vmem:[%s7485_s8 + $0x10] ss:$28 sps:$4 sm:$0xff]   ;;  %v5548_v31 = vld [vmem:[%s7485_s8 + $0x35c] ss:$28 sps:$4 sm:$0xff]  }
 0x365   :  { %v5543_v6 = vld [vmem:[%s7485_s8 + $0x390] ss:$28 sps:$4 sm:$0xff]  }
 0x367   :  { %3944 = vmatpush2.bf16.msra.mxu0 %v5462_v13  ;;  %3985 = vmatpush2.bf16.msra.mxu1 %v5465_v32  ;;  %v5551_v13 = vld [vmem:[%s7485_s8 + $0x6dc] ss:$28 sps:$4 sm:$0xff]  }
 0x368   :  { %3945 = vmatprep.subr.bf16.mxu0 %v5470_v35  ;;  %3986 = vmatprep.subr.bf16.mxu1 %v5473_v37  ;;  %v5546_v32 = vld [vmem:[%s7485_s8 + $0x358] ss:$28 sps:$4 sm:$0xff]   ;;  %v5554_v37 = vld [vmem:[%s7485_s8 + $0x324] ss:$28 sps:$4 sm:$0xff]  }
 0x369   :  { %v5549_v35 = vld [vmem:[%s7485_s8 + $0x6d8] ss:$28 sps:$4 sm:$0xff]  }
 0x36b   :  { %3946 = vmatpush2.bf16.msra.mxu0 %v5468_v38  ;;  %3987 = vmatpush2.bf16.msra.mxu1 %v5471_v39  ;;  %v5557_v38 = vld [vmem:[%s7485_s8 + $0x6a4] ss:$28 sps:$4 sm:$0xff]  }
 0x36c   :  { %3947 = vmatprep.subr.bf16.mxu0 %v5476_v40  ;;  %3988 = vmatprep.subr.bf16.mxu1 %v5479_v41  ;;  %v5552_v39 = vld [vmem:[%s7485_s8 + $0x320] ss:$28 sps:$4 sm:$0xff]   ;;  %v5560_v41 = vld [vmem:[%s7485_s8 + $0x2ec] ss:$28 sps:$4 sm:$0xff]  }
 0x36d   :  { %v5555_v40 = vld [vmem:[%s7485_s8 + $0x6a0] ss:$28 sps:$4 sm:$0xff]  }
 0x36f   :  { %3948 = vmatpush2.bf16.msra.mxu0 %v5474_v42  ;;  %3989 = vmatpush2.bf16.msra.mxu1 %v5477_v43  ;;  %v5563_v42 = vld [vmem:[%s7485_s8 + $0x66c] ss:$28 sps:$4 sm:$0xff]  }
 0x370   :  { %3949 = vmatprep.subr.bf16.mxu0 %v5482_v44  ;;  %3990 = vmatprep.subr.bf16.mxu1 %v5485_v45  ;;  %v5558_v43 = vld [vmem:[%s7485_s8 + $0x2e8] ss:$28 sps:$4 sm:$0xff]   ;;  %v5566_v45 = vld [vmem:[%s7485_s8 + $0x2b4] ss:$28 sps:$4 sm:$0xff]  }
 0x371   :  { %v5561_v44 = vld [vmem:[%s7485_s8 + $0x668] ss:$28 sps:$4 sm:$0xff]  }
 0x373   :  { %3950 = vmatpush2.bf16.msra.mxu0 %v5480_v46  ;;  %3991 = vmatpush2.bf16.msra.mxu1 %v5483_v47  ;;  %v5569_v46 = vld [vmem:[%s7485_s8 + $0x634] ss:$28 sps:$4 sm:$0xff]  }
 0x374   :  { %3951 = vmatprep.subr.bf16.mxu0 %v5488_v48  ;;  %3992 = vmatprep.subr.bf16.mxu1 %v5491_v52  ;;  %v5564_v47 = vld [vmem:[%s7485_s8 + $0x2b0] ss:$28 sps:$4 sm:$0xff]   ;;  %v5572_v52 = vld [vmem:[%s7485_s8 + $0x27c] ss:$28 sps:$4 sm:$0xff]  }
 0x375   :  { %v5567_v48 = vld [vmem:[%s7485_s8 + $0x630] ss:$28 sps:$4 sm:$0xff]  }
 0x377   :  { %3952 = vmatpush2.bf16.msra.mxu0 %v5486_v53  ;;  %3993 = vmatpush2.bf16.msra.mxu1 %v5489_v56  ;;  %v5575_v53 = vld [vmem:[%s7485_s8 + $0x5fc] ss:$28 sps:$4 sm:$0xff]  }
 0x378   :  { %3953 = vmatprep.subr.bf16.mxu0 %v5494_v57  ;;  %3994 = vmatprep.subr.bf16.mxu1 %v5497_v58  ;;  %v5570_v56 = vld [vmem:[%s7485_s8 + $0x278] ss:$28 sps:$4 sm:$0xff]   ;;  %v5578_v58 = vld [vmem:[%s7485_s8 + $0x244] ss:$28 sps:$4 sm:$0xff]  }
 0x379   :  { %v5573_v57 = vld [vmem:[%s7485_s8 + $0x5f8] ss:$28 sps:$4 sm:$0xff]  }
 0x37b   :  { %3954 = vmatpush2.bf16.msra.mxu0 %v5492_v59  ;;  %3995 = vmatpush2.bf16.msra.mxu1 %v5495_v62  ;;  %v5581_v59 = vld [vmem:[%s7485_s8 + $0x5c4] ss:$28 sps:$4 sm:$0xff]  }
 0x37c   :  { %4005 = vmatprep.subr.bf16.mxu0 %v5500_v63  ;;  %4046 = vmatprep.subr.bf16.mxu1 %v5503_v0  ;;  %v5576_v62 = vld [vmem:[%s7485_s8 + $0x240] ss:$28 sps:$4 sm:$0xff]   ;;  %v5584_v0 = vld [vmem:[%s7485_s8 + $0x20c] ss:$28 sps:$4 sm:$0xff]  }
 0x37d   :  { %v5579_v63 = vld [vmem:[%s7485_s8 + $0x5c0] ss:$28 sps:$4 sm:$0xff]  }
 0x37e   :  { %3956 = vmatmul.mubr.bf16.vlgmr.msra.gmra.mxu0 %v6961_v54  ;;  %3997 = vmatmul.mubr.bf16.vlgmr.msra.gmra.mxu1 %v6963_v55 }
 0x37f   :  { %4006 = vmatpush1.bf16.msra.mxu0 %v5498_v1  ;;  %4037 = vmatprep.mubr.bf16.mxu0 %v6951_v49  ;;  %v5587_v1 = vld [vmem:[%s7485_s8 + $0x58c] ss:$28 sps:$4 sm:$0xff]  }
 0x380   :  { %4047 = vmatpush1.bf16.msra.mxu1 %v5501_v2  ;;  %4078 = vmatprep.mubr.bf16.mxu1 %v6953_v50  ;;  %v5582_v2 = vld [vmem:[%s7485_s8 + $0x208] ss:$28 sps:$4 sm:$0xff]  }
 0x381   :  { %4007 = vmatprep.subr.bf16.mxu0 %v5506_v3  ;;  %4048 = vmatprep.subr.bf16.mxu1 %v5509_v4  ;;  %v5585_v3 = vld [vmem:[%s7485_s8 + $0x588] ss:$28 sps:$4 sm:$0xff]   ;;  %v5590_v4 = vld [vmem:[%s7485_s8 + $0x1d4] ss:$28 sps:$4 sm:$0xff]  }
 0x383   :  { %4008 = vmatpush1.bf16.msra.mxu0 %v5504_v5  ;;  %v5593_v5 = vld [vmem:[%s7485_s8 + $0x554] ss:$28 sps:$4 sm:$0xff]  }
 0x384   :  { %4049 = vmatpush1.bf16.msra.mxu1 %v5507_v8  ;;  %4009 = vmatprep.subr.bf16.mxu0 %v5512_v9  ;;  %v5588_v8 = vld [vmem:[%s7485_s8 + $0x1d0] ss:$28 sps:$4 sm:$0xff]  }
 0x385   :  { %4050 = vmatprep.subr.bf16.mxu1 %v5515_v10  ;;  %v5591_v9 = vld [vmem:[%s7485_s8 + $0x550] ss:$28 sps:$4 sm:$0xff]   ;;  %v5594_v10 = vld [vmem:[%s7485_s8 + $0x360] ss:$28 sps:$4 sm:$0xff]  }
 0x387   :  { %4010 = vmatpush1.bf16.msra.mxu0 %v5510_v11  ;;  %v5595_v11 = vld [vmem:[%s7485_s8 + $0x6e0] ss:$28 sps:$4 sm:$0xff]  }
 0x388   :  { %4051 = vmatpush1.bf16.msra.mxu1 %v5513_v12  ;;  %4011 = vmatprep.subr.bf16.mxu0 %v5518_v15  ;;  %v5596_v12 = vld [vmem:[%s7485_s8 + $0x1a0] ss:$28 sps:$4 sm:$0xff]  }
 0x389   :  { %4052 = vmatprep.subr.bf16.mxu1 %v5521_v16  ;;  %v5597_v15 = vld [vmem:[%s7485_s8 + $0x520] ss:$28 sps:$4 sm:$0xff]   ;;  %v5598_v16 = vld [vmem:[%s7485_s8 + $0x328] ss:$28 sps:$4 sm:$0xff]  }
 0x38b   :  { %4012 = vmatpush1.bf16.msra.mxu0 %v5516_v17  ;;  %v5599_v17 = vld [vmem:[%s7485_s8 + $0x6a8] ss:$28 sps:$4 sm:$0xff]  }
 0x38c   :  { %4053 = vmatpush1.bf16.msra.mxu1 %v5519_v18  ;;  %4013 = vmatprep.subr.bf16.mxu0 %v5524_v19  ;;  %v5600_v18 = vld [vmem:[%s7485_s8 + $0x168] ss:$28 sps:$4 sm:$0xff]  }
 0x38d   :  { %4054 = vmatprep.subr.bf16.mxu1 %v5527_v20  ;;  %v5601_v19 = vld [vmem:[%s7485_s8 + $0x4e8] ss:$28 sps:$4 sm:$0xff]   ;;  %v5602_v20 = vld [vmem:[%s7485_s8 + $0x2f0] ss:$28 sps:$4 sm:$0xff]  }
 0x38f   :  { %4014 = vmatpush1.bf16.msra.mxu0 %v5522_v21  ;;  %v5603_v21 = vld [vmem:[%s7485_s8 + $0x670] ss:$28 sps:$4 sm:$0xff]  }
 0x390   :  { %4055 = vmatpush1.bf16.msra.mxu1 %v5525_v22  ;;  %4015 = vmatprep.subr.bf16.mxu0 %v5530_v23  ;;  %v5605_v22 = vld [vmem:[%s7485_s8 + $0x4b0] ss:$28 sps:$4 sm:$0xff]   ;;  %v5607_v23 = vld [vmem:[%s7485_s8 + $0x638] ss:$28 sps:$4 sm:$0xff]  }
 0x391   :  { %4056 = vmatprep.subr.bf16.mxu1 %v5533_v24  ;;  %v5608_v24 = vld [vmem:[%s7485_s8 + $0xf8] ss:$28 sps:$4 sm:$0xff]  }
 0x393   :  { %4016 = vmatpush1.bf16.msra.mxu0 %v5528_v7  ;;  %v5609_v7 = vld [vmem:[%s7485_s8 + $0x478] ss:$28 sps:$4 sm:$0xff]  }
 0x394   :  { %4057 = vmatpush1.bf16.msra.mxu1 %v5531_v25  ;;  %4017 = vmatprep.subr.bf16.mxu0 %v5536_v26  ;;  %v5610_v25 = vld [vmem:[%s7485_s8 + $0x280] ss:$28 sps:$4 sm:$0xff]  }
 0x395   :  { %4058 = vmatprep.subr.bf16.mxu1 %v5539_v27  ;;  %v5611_v26 = vld [vmem:[%s7485_s8 + $0x600] ss:$28 sps:$4 sm:$0xff]  }
 0x396   :  { %v5612_v27 = vld [vmem:[%s7485_s8 + $0xc0] ss:$28 sps:$4 sm:$0xff]  }
 0x397   :  { %4018 = vmatpush1.bf16.msra.mxu0 %v5534_v14  ;;  %v5613_v14 = vld [vmem:[%s7485_s8 + $0x440] ss:$28 sps:$4 sm:$0xff]  }
 0x398   :  { %4059 = vmatpush1.bf16.msra.mxu1 %v5537_v51  ;;  %4019 = vmatprep.subr.bf16.mxu0 %v5542_v28  ;;  %v5614_v51 = vld [vmem:[%s7485_s8 + $0x248] ss:$28 sps:$4 sm:$0xff]  }
 0x399   :  { %4060 = vmatprep.subr.bf16.mxu1 %v5545_v29  ;;  %v5615_v28 = vld [vmem:[%s7485_s8 + $0x5c8] ss:$28 sps:$4 sm:$0xff]  }
 0x39a   :  { %v5616_v29 = vld [vmem:[%s7485_s8 + $0x88] ss:$28 sps:$4 sm:$0xff]  }
 0x39b   :  { %4020 = vmatpush1.bf16.msra.mxu0 %v5540_v30  ;;  %v5617_v30 = vld [vmem:[%s7485_s8 + $0x408] ss:$28 sps:$4 sm:$0xff]  }
 0x39c   :  { %4061 = vmatpush1.bf16.msra.mxu1 %v5543_v6  ;;  %4021 = vmatprep.subr.bf16.mxu0 %v5548_v31  ;;  %v5618_v6 = vld [vmem:[%s7485_s8 + $0x210] ss:$28 sps:$4 sm:$0xff]  }
 0x39d   :  { %4062 = vmatprep.subr.bf16.mxu1 %v5551_v13  ;;  %v5619_v31 = vld [vmem:[%s7485_s8 + $0x590] ss:$28 sps:$4 sm:$0xff]  }
 0x39e   :  { %v5620_v13 = vld [vmem:[%s7485_s8 + $0x50] ss:$28 sps:$4 sm:$0xff]  }
 0x39f   :  { %4022 = vmatpush2.bf16.msra.mxu0 %v5546_v32  ;;  %v5621_v32 = vld [vmem:[%s7485_s8 + $0x3d0] ss:$28 sps:$4 sm:$0xff]  }
 0x3a0   :  { %4063 = vmatpush2.bf16.msra.mxu1 %v5549_v35  ;;  %4023 = vmatprep.subr.bf16.mxu0 %v5554_v37  ;;  %v5622_v35 = vld [vmem:[%s7485_s8 + $0x1d8] ss:$28 sps:$4 sm:$0xff]  }
 0x3a1   :  { %4064 = vmatprep.subr.bf16.mxu1 %v5557_v38  ;;  %v5623_v37 = vld [vmem:[%s7485_s8 + $0x558] ss:$28 sps:$4 sm:$0xff]  }
 0x3a2   :  { %v5624_v38 = vld [vmem:[%s7485_s8 + $0x18] ss:$28 sps:$4 sm:$0xff]  }
 0x3a3   :  { %4024 = vmatpush2.bf16.msra.mxu0 %v5552_v39  ;;  %v5625_v39 = vld [vmem:[%s7485_s8 + $0x398] ss:$28 sps:$4 sm:$0xff]  }
 0x3a4   :  { %4065 = vmatpush2.bf16.msra.mxu1 %v5555_v40  ;;  %4025 = vmatprep.subr.bf16.mxu0 %v5560_v41  ;;  %v7452_v40 = vld [vmem:[%s7486_s9] sm:$0x7f] }
 0x3a5   :  { %4066 = vmatprep.subr.bf16.mxu1 %v5563_v42  ;;  %v2657_v41 = vrot.slane %v7452_v40, %v6622_v34  ;;  %v2661_v42 = vrot.slane %v7452_v40, %v6628_v36 }
 0x3a7   :  { %4026 = vmatpush2.bf16.msra.mxu0 %v5558_v43 }
 0x3a8   :  { %4067 = vmatpush2.bf16.msra.mxu1 %v5561_v44  ;;  %4027 = vmatprep.subr.bf16.mxu0 %v5566_v45 }
 0x3a9   :  { %4068 = vmatprep.subr.bf16.mxu1 %v5569_v46 }
 0x3ab   :  { %4028 = vmatpush2.bf16.msra.mxu0 %v5564_v47 }
 0x3ac   :  { %4069 = vmatpush2.bf16.msra.mxu1 %v5567_v48  ;;  %4029 = vmatprep.subr.bf16.mxu0 %v5572_v52 }
 0x3ad   :  { %4070 = vmatprep.subr.bf16.mxu1 %v5575_v53 }
 0x3af   :  { %4030 = vmatpush2.bf16.msra.mxu0 %v5570_v56 }
 0x3b0   :  { %4071 = vmatpush2.bf16.msra.mxu1 %v5573_v57  ;;  %4031 = vmatprep.subr.bf16.mxu0 %v5578_v58 }
 0x3b1   :  { %4072 = vmatprep.subr.bf16.mxu1 %v5581_v59 }
 0x3b3   :  { %4032 = vmatpush2.bf16.msra.mxu0 %v5576_v62 }
 0x3b4   :  { %4073 = vmatpush2.bf16.msra.mxu1 %v5579_v63  ;;  %4033 = vmatprep.subr.bf16.mxu0 %v5584_v0 }
 0x3b5   :  { %4074 = vmatprep.subr.bf16.mxu1 %v5587_v1 }
 0x3b7   :  { %4034 = vmatpush2.bf16.msra.mxu0 %v5582_v2 }
 0x3b8   :  { %4075 = vmatpush2.bf16.msra.mxu1 %v5585_v3  ;;  %4035 = vmatprep.subr.bf16.mxu0 %v5590_v4 }
 0x3b9   :  { %4076 = vmatprep.subr.bf16.mxu1 %v5593_v5  ;;  %v2665_v5 = vrot.slane %v7452_v40, %v6634_v60 }
 0x3bb   :  { %4036 = vmatpush2.bf16.msra.mxu0 %v5588_v8  ;;  %v2669_v8 = vrot.slane %v7452_v40, %v6637_v61 }
 0x3bc   :  { %4077 = vmatpush2.bf16.msra.mxu1 %v5591_v9  ;;  %4813 = vmatprep.subr.bf16.mxu0 %v5594_v10 }
 0x3bd   :  { %4835 = vmatprep.subr.bf16.mxu1 %v5595_v11 }
 0x3be   :  { %4038 = vmatmul.mubr.bf16.vlgmr.msra.gmra.mxu0 %v6961_v54 }
 0x3bf   :  { %4079 = vmatmul.mubr.bf16.vlgmr.msra.gmra.mxu1 %v6963_v55  ;;  %4814 = vmatpush3.bf16.msra.mxu0 %v5596_v12 }
 0x3c0   :  { %4119 = vmatprep.mubr.bf16.mxu0 %v6951_v49  ;;  %4836 = vmatpush3.bf16.msra.mxu1 %v5597_v15  ;;  %v5604_v49 = vld [vmem:[%s7485_s8 + $0x130] ss:$28 sps:$4 sm:$0xff]  }
 0x3c1   :  { %4159 = vmatprep.mubr.bf16.mxu1 %v6953_v50  ;;  %4815 = vmatprep.subr.bf16.mxu0 %v5598_v16  ;;  %v5606_v50 = vld [vmem:[%s7485_s8 + $0x2b8] ss:$28 sps:$4 sm:$0xff]   ;;  %s5722_s8 = smov [#allocation4]  }
 0x3c2   :  { %4837 = vmatprep.subr.bf16.mxu1 %v5599_v17  ;;  %s4255_s9 = sshll.u32 %s5722_s8, 4  ;;  %s4256_s9 = int_to_ptr.vmem [resolvable:$true] %s4255_s9 }
 0x3c3   :  { %4816 = vmatpush3.bf16.msra.mxu0 %v5600_v18  ;;  %s5657_s28 = scalar_lea.vmem %s4256_s9, 128  ;;  %p5662_p1 = scmp.lt.s32.totalorder %s4256_s9, %s4256_s9 }
 0x3c4   :  { %4838 = vmatpush3.bf16.msra.mxu1 %v5601_v19  ;;  %4817 = vmatprep.subr.bf16.mxu0 %v5602_v20  ;;  %p5658_p0 = scmp.ne.s32.totalorder %s4256_s9, %s5657_s28  ;;  %p5663_p2 = scmp.lt.s32.totalorder %s5657_s28, %s5657_s28 }
 0x3c5   :  { %4839 = vmatprep.subr.bf16.mxu1 %v5603_v21 }
 0x3c6   :  { %p5664_p3 = por %p5663_p2, %p5662_p1 }
 0x3c7   :  { %4818 = vmatpush3.bf16.msra.mxu0 %v5604_v49 }
 0x3c8   :  { %4840 = vmatpush3.bf16.msra.mxu1 %v5605_v22  ;;  %4819 = vmatprep.subr.bf16.mxu0 %v5606_v50  ;;  %p5665_p4 = pnand %p5664_p3, %p5658_p0 }
 0x3c9   :  { %4841 = vmatprep.subr.bf16.mxu1 %v5607_v23 }
 0x3cb   :  { %4820 = vmatpush3.bf16.msra.mxu0 %v5608_v24 }
 0x3cc   :  { %4842 = vmatpush3.bf16.msra.mxu1 %v5609_v7  ;;  %4821 = vmatprep.subr.bf16.mxu0 %v5610_v25 }
 0x3cd   :  { %4843 = vmatprep.subr.bf16.mxu1 %v5611_v26 }
 0x3cf   :  { %4822 = vmatpush3.bf16.msra.mxu0 %v5612_v27 }
 0x3d0   :  { %4844 = vmatpush3.bf16.msra.mxu1 %v5613_v14  ;;  %4823 = vmatprep.subr.bf16.mxu0 %v5614_v51 }
 0x3d1   :  { %4845 = vmatprep.subr.bf16.mxu1 %v5615_v28 }
 0x3d3   :  { %4824 = vmatpush3.bf16.msra.mxu0 %v5616_v29 }
 0x3d4   :  { %4846 = vmatpush3.bf16.msra.mxu1 %v5617_v30  ;;  %4825 = vmatprep.subr.bf16.mxu0 %v5618_v6 }
 0x3d5   :  { %4847 = vmatprep.subr.bf16.mxu1 %v5619_v31 }
 0x3d7   :  { %4826 = vmatpush3.bf16.msra.mxu0 %v5620_v13 }
 0x3d8   :  { %4848 = vmatpush3.bf16.msra.mxu1 %v5621_v32  ;;  %4827 = vmatprep.subr.bf16.mxu0 %v5622_v35 }
 0x3d9   :  { %4849 = vmatprep.subr.bf16.mxu1 %v5623_v37 }
 0x3db   :  { %4828 = vmatpush3.bf16.msra.mxu0 %v5624_v38 }
 0x3dc   :  { %4850 = vmatpush3.bf16.msra.mxu1 %v5625_v39 }
 0x3de   :  { %4120 = vmatmul.mubr.bf16.vlgmr.msra.gmra.mxu0 %v6961_v54 }
 0x3df   :  { %4160 = vmatmul.mubr.bf16.vlgmr.msra.gmra.mxu1 %v6963_v55 }
 0x3fe   :  { %v3875_v43 = vpop.f32.mrf.mxu0  ;;  %v3916_v44 = vpop.f32.mrf.mxu1 }
 0x3ff   :  { %v3876_v45 = vadd.f32 %v3875_v43, %v2657_v41 }
 0x400   :  { %v3877_v46 = vpop.f32.mrf.mxu0  ;;  %v3918_v47 = vpop.f32.mrf.mxu1 }
 0x401   :  { %v3917_v48 = vadd.f32 %v3916_v44, %v3876_v45  ;;  %v3878_v54 = vadd.f32 %v3877_v46, %v2661_v42 }
 0x402   :  { %v3879_v52 = vpop.f32.mrf.mxu0  ;;  %v3920_v55 = vpop.f32.mrf.mxu1 }
 0x403   :  { %v4167_v53 = vsub.f32 0.0, %v3917_v48  ;;  %v3919_v56 = vadd.f32 %v3918_v47, %v3878_v54 }
 0x404   :  { %v3880_v57 = vpop.f32.mrf.mxu0  ;;  %v3921_v58 = vpop.f32.mrf.mxu1 }
 0x405   :  { %v4174_v59 = vmul.f32 1.442695, %v4167_v53  ;;  %v4168_v62 = vsub.f32 0.0, %v3919_v56 }
 0x407   :  { %5628 = vpow2.f32 %v4174_v59  ;;  %v4176_v34 = vmul.f32 1.442695, %v4168_v62 }
 0x409   :  { %5630 = vpow2.f32 %v4176_v34 }
 0x414   :  { %v5629_v63 = vpop.eup %5628 }
 0x415   :  { %v4188_v36 = vadd.f32 1.0, %v5629_v63 }
 0x416   :  { %v5631_v0 = vpop.eup %5630 }
 0x417   :  { %v4189_v1 = vadd.f32 1.0, %v5631_v0  ;;  %5632 = vrcp.f32 %v4188_v36 }
 0x419   :  { %5634 = vrcp.f32 %v4189_v1 }
 0x424   :  { %v5633_v2 = vpop.eup %5632 }
 0x426   :  { %v5635_v3 = vpop.eup %5634 }
 0x427   :  { %v4809_v4 = vpack.c.bf16 %v5635_v3, %v5633_v2 }
 0x429   :  { %4231 = vst [vmem:[#allocation2] sm:$0xff] %v4809_v4 }
 0x43e   :  { %v3957_v9 = vpop.f32.mrf.mxu0  ;;  %v3998_v10 = vpop.f32.mrf.mxu1 }
 0x43f   :  { %5668 = shalt.err (!%p5665_p4)
}
 0x440   :  { %4258 = dma.vmem_to_hbm [thread:$0]  %s4256_s9, 128, %s7488_s11, [#allocation5]   ;;  %v3958_v60 = vadd.f32 %v3957_v9, %v2665_v5  ;;  %v3959_v11 = vpop.f32.mrf.mxu0  ;;  %v4000_v12 = vpop.f32.mrf.mxu1 }
 0x441   :  { %v3960_v16 = vadd.f32 %v3959_v11, %v2669_v8  ;;  %s5723_s13 = smov [#allocation6]  }
 0x442   :  { %v3999_v15 = vadd.f32 %v3998_v10, %v3958_v60  ;;  %v3961_v61 = vpop.f32.mrf.mxu0  ;;  %v4002_v17 = vpop.f32.mrf.mxu1  ;;  %s4265_s14 = sshll.u32 %s5723_s13, 4  ;;  %s4266_s14 = int_to_ptr.vmem [resolvable:$true] %s4265_s14 }
 0x443   :  { %v4001_v19 = vadd.f32 %v4000_v12, %v3960_v16  ;;  %s5677_s11 = scalar_lea.vmem %s4266_s14, 128  ;;  %p5682_p6 = scmp.lt.s32.totalorder %s4266_s14, %s4266_s14 }
 0x444   :  { %v4169_v18 = vsub.f32 0.0, %v3999_v15  ;;  %v3962_v20 = vpop.f32.mrf.mxu0  ;;  %v4003_v21 = vpop.f32.mrf.mxu1  ;;  %p5678_p5 = scmp.ne.s32.totalorder %s4266_s14, %s5677_s11  ;;  %p5683_p7 = scmp.lt.s32.totalorder %s5677_s11, %s5677_s11 }
 0x445   :  { %v4170_v22 = vsub.f32 0.0, %v4001_v19 }
 0x446   :  { %v4178_v49 = vmul.f32 1.442695, %v4169_v18  ;;  %p5684_p8 = por %p5683_p7, %p5682_p6 }
 0x447   :  { %v4180_v50 = vmul.f32 1.442695, %v4170_v22 }
 0x448   :  { %5636 = vpow2.f32 %v4178_v49  ;;  %p5685_p9 = pnand %p5684_p8, %p5678_p5 }
 0x449   :  { %5638 = vpow2.f32 %v4180_v50 }
 0x44a   :  { %5688 = shalt.err (!%p5685_p9)
}
 0x44b   :  { %4268 = dma.vmem_to_hbm [thread:$0]  %s4266_s14, 128, %s7489_s12, [#allocation5]   ;;  %v2672_v51 = vsub.s32 4, %v6619_v33  ;;  %v2676_v28 = vsub.s32 5, %v6619_v33  ;;  %v2680_v56 = vsub.s32 6, %v6619_v33  ;;  %vm4234_vm2 = vcmask 125952  }
 0x44c   :  { %s5724_s12 = smov [#allocation2]  }
 0x44d   :  { %v2673_v29 = vrot.slane %v7452_v40, %v2672_v51  ;;  %v2677_v30 = vrot.slane %v7452_v40, %v2676_v28  ;;  %v2681_v59 = vrot.slane %v7452_v40, %v2680_v56  ;;  %s4245_s16 = sshll.u32 %s5724_s12, 4  ;;  %s4246_s16 = int_to_ptr.vmem [resolvable:$true] %s4245_s16 }
 0x44e   :  { %s5697_s17 = scalar_lea.vmem %s4246_s16, 448  ;;  %p5702_p11 = scmp.lt.s32.totalorder %s4246_s16, %s4246_s16 }
 0x44f   :  { %p5698_p10 = scmp.ne.s32.totalorder %s4246_s16, %s5697_s17  ;;  %p5703_p12 = scmp.lt.s32.totalorder %s5697_s17, %s5697_s17 }
 0x451   :  { %p5704_p13 = por %p5703_p12, %p5702_p11 }
 0x453   :  { %p5705_p0 = pnand %p5704_p13, %p5698_p10 }
 0x455   :  { %v5637_v23 = vpop.eup %5636 }
 0x456   :  { %v4190_v24 = vadd.f32 1.0, %v5637_v23  ;;  %v5639_v7 = vpop.eup %5638 }
 0x457   :  { %v4191_v25 = vadd.f32 1.0, %v5639_v7 }
 0x458   :  { %5640 = vrcp.f32 %v4190_v24 }
 0x459   :  { %5642 = vrcp.f32 %v4191_v25 }
 0x465   :  { %v5641_v26 = vpop.eup %5640 }
 0x466   :  { %v5643_v27 = vpop.eup %5642 }
 0x467   :  { %v4810_v14 = vpack.c.bf16 %v5643_v27, %v5641_v26 }
 0x469   :  { %4232 = vst [vmem:[#allocation2 + $0x8] sm:$0xff] %v4810_v14 }
 0x47e   :  { %v4039_v6 = vpop.f32.mrf.mxu0 }
 0x47f   :  { %v4040_v31 = vadd.f32 %v4039_v6, %v2673_v29  ;;  %v4080_v13 = vpop.f32.mrf.mxu1 }
 0x480   :  { %v4041_v32 = vpop.f32.mrf.mxu0 }
 0x481   :  { %v4081_v35 = vadd.f32 %v4080_v13, %v4040_v31  ;;  %v4042_v37 = vadd.f32 %v4041_v32, %v2677_v30  ;;  %v4082_v38 = vpop.f32.mrf.mxu1 }
 0x482   :  { %v4043_v39 = vpop.f32.mrf.mxu0 }
 0x483   :  { %v4171_v41 = vsub.f32 0.0, %v4081_v35  ;;  %v4083_v42 = vadd.f32 %v4082_v38, %v4042_v37  ;;  %v4084_v43 = vpop.f32.mrf.mxu1 }
 0x484   :  { %v4044_v44 = vpop.f32.mrf.mxu0 }
 0x485   :  { %v4182_v45 = vmul.f32 1.442695, %v4171_v41  ;;  %v4172_v46 = vsub.f32 0.0, %v4083_v42  ;;  %v4085_v47 = vpop.f32.mrf.mxu1 }
 0x487   :  { %5644 = vpow2.f32 %v4182_v45  ;;  %v4184_v48 = vmul.f32 1.442695, %v4172_v46 }
 0x489   :  { %5646 = vpow2.f32 %v4184_v48 }
 0x494   :  { %v5645_v54 = vpop.eup %5644 }
 0x495   :  { %v4192_v52 = vadd.f32 1.0, %v5645_v54 }
 0x496   :  { %v5647_v55 = vpop.eup %5646 }
 0x497   :  { %v4193_v53 = vadd.f32 1.0, %v5647_v55  ;;  %5648 = vrcp.f32 %v4192_v52 }
 0x499   :  { %5650 = vrcp.f32 %v4193_v53 }
 0x49e   :  { %v4829_v57 = vpop.f32.mrf.mxu0 }
 0x49f   :  { %v4851_v58 = vpop.f32.mrf.mxu1 }
 0x4a0   :  { %v4830_v62 = vpop.f32.mrf.mxu0 }
 0x4a1   :  { %v4831_v34 = vadd.f32 %v4830_v62, %v4829_v57  ;;  %v4852_v63 = vpop.f32.mrf.mxu1 }
 0x4a2   :  { %v4832_v36 = vpop.f32.mrf.mxu0  ;;  %v4853_v1 = vadd.f32 %v4852_v63, %v4851_v58 }
 0x4a3   :  { %v4122_v0 = vadd.f32 %v4831_v34, %v2681_v59  ;;  %v4854_v2 = vpop.f32.mrf.mxu1 }
 0x4a4   :  { %v4833_v3 = vpop.f32.mrf.mxu0  ;;  %v5649_v4 = vpop.eup %5648 }
 0x4a5   :  { %v4162_v5 = vadd.f32 %v4853_v1, %v4122_v0  ;;  %v4855_v8 = vpop.f32.mrf.mxu1 }
 0x4a6   :  { %v5651_v9 = vpop.eup %5650 }
 0x4a7   :  { %v4173_v10 = vsub.f32 0.0, %v4162_v5  ;;  %v4811_v60 = vpack.c.bf16 %v5651_v9, %v5649_v4 }
 0x4a9   :  { %v4186_v11 = vmul.f32 1.442695, %v4173_v10  ;;  %4233 = vst [vmem:[#allocation2 + $0x10] sm:$0xff] %v4811_v60 }
 0x4ab   :  { %5652 = vpow2.f32 %v4186_v11 }
 0x4b8   :  { %v5653_v33 = vpop.eup %5652 }
 0x4b9   :  { %v4194_v12 = vadd.f32 1.0, %v5653_v33 }
 0x4bb   :  { %5654 = vrcp.f32 %v4194_v12 }
 0x4c8   :  { %v5655_v40 = vpop.eup %5654 }
 0x4c9   :  { %v4812_v15 = vpack.c.bf16 %v5655_v40, %v5655_v40 }
 0x4cb   :  { %4235 = vst.msk [vmem:[#allocation2 + $0x18] sm:$0xf] %vm4234_vm2, %v4812_v15 }
 0x4cc   :  { %5708 = shalt.err (!%p5705_p0)
}
 0x4cd   :  { %4248 = dma.vmem_to_hbm [thread:$0]  %s4246_s16, 448, %s7487_s10, [#allocation3]  }
 0x4ce   :  { %5717 = dma.done.wait [#allocation3], 448  }
 0x4cf   :  { %5718 = vsyncadd [#allocation3], 4294966848 }
 0x4d0   :  { %5719 = dma.done.wait [#allocation5], 256  }
 0x4d1   :  { %5720 = vsyncadd [#allocation5], 4294967040 }
 0x4d2   :  { %4278 = vsyncpa [#allocation3], 1 }
 0x4d3   :  { %4279 = vsyncpa [#allocation5], 1 }

</bundles_post_ra>
